<compile_context>
chip_gen: v7x
topology: tpu7x:2x2x1
jax: 0.10.0
libtpu: 0.0.40
codegen_flags: <defaults>
</compile_context>

<pallas_src>
import functools

import jax
import jax.numpy as jnp
from jax.experimental import pallas as pl
from jax.experimental.pallas import tpu as pltpu

EPS = 1e-5
_VMEM_LIMIT = 32 * 1024 * 1024   # safe scoped-VMEM limit on v5e/v6e/v7x


# -----------------------------------------------------------------------------
# Fused (optional input BN+ReLU) -> 3x3 conv -> per-channel sum/sumsq kernel.
# Grid: (num_splits ["parallel"], tiles_per_split ["arbitrary"]).
# -----------------------------------------------------------------------------
def _conv_stats_kernel(x_ref, w_ref, b_ref, sc_ref, sh_ref,      # inputs
                       y_ref, psum_ref, psumsq_ref,               # outputs
                       *, height, width, m_valid, m_pad,
                       num_splits, tiles_per_split, apply_input_bn):
    i = pl.program_id(1)

    @pl.when(i == 0)                      # new split -> reset this split's stats
    def _init():
        psum_ref[...] = jnp.zeros_like(psum_ref)
        psumsq_ref[...] = jnp.zeros_like(psumsq_ref)

    a = x_ref[...]                        # (c_in, tile_m) f32
    if apply_input_bn:                    # previous stage's BN+ReLU, fused here
        a = jnp.maximum(a * sc_ref[...] + sh_ref[...], 0.0)

    c_out = w_ref.shape[1]
    tile_m = a.shape[1]
    hw = height * width

    # Per-column position within its image.  tile_m is a multiple of hw and
    # tiles start on image boundaries, so this is tile-position independent.
    col = jax.lax.broadcasted_iota(jnp.int32, a.shape, 1)
    q = col % hw                          # flat position inside the image
    wp = col % width                      # column inside the row
    row_ok = {-1: q >= width, 0: None, 1: q < hw - width}
    col_ok = {-1: wp >= 1,    0: None, 1: wp < width - 1}

    # 3x3 conv: each tap = lane roll of the (post-prologue) activation plus a
    # boundary mask; nine small MXU matmuls accumulate in f32.  Valid output
    # positions never read across an image boundary, so no halo is needed.
    acc = jnp.zeros((c_out, tile_m), jnp.float32)
    t = 0
    for dh in (-1, 0, 1):
        for dw in (-1, 0, 1):
            d = dh * width + dw
            tap = a if d == 0 else pltpu.roll(a, shift=(-d) % tile_m, axis=1)
            mask = row_ok[dh]
            if col_ok[dw] is not None:
                mask = col_ok[dw] if mask is None else jnp.logical_and(mask, col_ok[dw])
            if mask is not None:
                tap = jnp.where(mask, tap, 0.0)
            acc = acc + jnp.dot(w_ref[t], tap, preferred_element_type=jnp.float32)
            t += 1

    y = acc + b_ref[...]                  # (c_out, tile_m) + (c_out, 1)
    y_ref[...] = y                        # lane-dense store of pre-BN conv output

    # Per-channel sum / sum-of-squares.  Fake (padded) columns only exist in
    # the very last tile, so the masking work is gated to that tile only.
    if m_pad == m_valid:
        psum_ref[...] += jnp.sum(y, axis=1, keepdims=True)
        psumsq_ref[...] += jnp.sum(y * y, axis=1, keepdims=True)
    else:
        p = pl.program_id(0)
        is_last = jnp.logical_and(p == num_splits - 1, i == tiles_per_split - 1)

        @pl.when(jnp.logical_not(is_last))
        def _acc_full():
            psum_ref[...] += jnp.sum(y, axis=1, keepdims=True)
            psumsq_ref[...] += jnp.sum(y * y, axis=1, keepdims=True)

        @pl.when(is_last)
        def _acc_masked():
            gcol = jax.lax.broadcasted_iota(jnp.int32, y.shape, 1) + (m_pad - tile_m)
            ym = jnp.where(gcol < m_valid, y, 0.0)
            psum_ref[...] += jnp.sum(ym, axis=1, keepdims=True)
            psumsq_ref[...] += jnp.sum(ym * ym, axis=1, keepdims=True)


def _conv_stats_pass(x_flat, w_taps, b_col, sc_col, sh_col, *, height, width,
                     tile_m, num_splits, tiles_per_split, m_valid,
                     apply_input_bn):
    c_in, m_pad = x_flat.shape
    c_out = w_taps.shape[1]
    kernel = functools.partial(
        _conv_stats_kernel, height=height, width=width, m_valid=m_valid,
        m_pad=m_pad, num_splits=num_splits, tiles_per_split=tiles_per_split,
        apply_input_bn=apply_input_bn)
    return pl.pallas_call(
        kernel,
        grid_spec=pltpu.PrefetchScalarGridSpec(
            num_scalar_prefetch=0,
            grid=(num_splits, tiles_per_split),
            in_specs=[
                pl.BlockSpec((c_in, tile_m),
                             lambda p, i: (0, p * tiles_per_split + i)),
                pl.BlockSpec((9, c_out, c_in), lambda p, i: (0, 0, 0)),
                pl.BlockSpec((c_out, 1), lambda p, i: (0, 0)),    # conv bias
                pl.BlockSpec((c_in, 1), lambda p, i: (0, 0)),     # input BN scale
                pl.BlockSpec((c_in, 1), lambda p, i: (0, 0)),     # input BN shift
            ],
            out_specs=[
                pl.BlockSpec((c_out, tile_m),
                             lambda p, i: (0, p * tiles_per_split + i)),
                pl.BlockSpec((None, c_out, 1), lambda p, i: (p, 0, 0)),  # sum
                pl.BlockSpec((None, c_out, 1), lambda p, i: (p, 0, 0)),  # sumsq
            ],
        ),
        out_shape=[
            jax.ShapeDtypeStruct((c_out, m_pad), jnp.float32),
            jax.ShapeDtypeStruct((num_splits, c_out, 1), jnp.float32),
            jax.ShapeDtypeStruct((num_splits, c_out, 1), jnp.float32),
        ],
        compiler_params=pltpu.CompilerParams(
            dimension_semantics=("parallel", "arbitrary"),
            vmem_limit_bytes=_VMEM_LIMIT),
    )(x_flat, w_taps, b_col, sc_col, sh_col)


# -----------------------------------------------------------------------------
# Final BN + ReLU (only needed for the last stage's output).
# -----------------------------------------------------------------------------
def _bn_relu_kernel(sc_ref, sh_ref, y_ref, o_ref):
    o_ref[...] = jnp.maximum(y_ref[...] * sc_ref[...] + sh_ref[...], 0.0)


def _bn_relu_pass(y_flat, sc_col, sh_col, *, tile_m):
    c, m_pad = y_flat.shape
    return pl.pallas_call(
        _bn_relu_kernel,
        grid_spec=pltpu.PrefetchScalarGridSpec(
            num_scalar_prefetch=0,
            grid=(m_pad // tile_m,),
            in_specs=[pl.BlockSpec((c, 1), lambda i: (0, 0)),
                      pl.BlockSpec((c, 1), lambda i: (0, 0)),
                      pl.BlockSpec((c, tile_m), lambda i: (0, i))],
            out_specs=pl.BlockSpec((c, tile_m), lambda i: (0, i)),
        ),
        out_shape=jax.ShapeDtypeStruct((c, m_pad), jnp.float32),
        compiler_params=pltpu.CompilerParams(
            dimension_semantics=("parallel",),
            vmem_limit_bytes=_VMEM_LIMIT),
    )(sc_col, sh_col, y_flat)


def _scale_shift(psum, psumsq, gamma, beta, count, eps):
    """Combine per-split partial sums (wrapper-side finalize, var >= 0 clamp)."""
    s = jnp.sum(psum, axis=0)[:, 0]
    q = jnp.sum(psumsq, axis=0)[:, 0]
    mean = s / count
    var = jnp.maximum(q / count - mean * mean, 0.0)    # guard cancellation
    scale = gamma * jax.lax.rsqrt(var + eps)
    shift = beta - mean * scale
    return scale.reshape(-1, 1), shift.reshape(-1, 1)


def block_encoder_forward(x_nchw, params, *, tile_m_target=4096, max_splits=2,
                          eps=EPS):
    """Matches block_encoder.forward (use_padding=True): NCHW in, NCHW out."""
    # TODO(synk): use_padding=False branch (stride-2 first conv) not implemented.
    n, c_in, height, width = x_nchw.shape
    c_out = params["w1"].shape[0]
    hw = height * width

    # Tiles cover whole images so the in-kernel rolled taps never need a halo.
    # (Very large H*W would need intra-image tiling with halos instead.)
    ipt = max(1, min(n, tile_m_target // hw))          # images per tile
    num_tiles = -(-n // ipt)
    tile_m = ipt * hw
    m_valid = n * hw
    m_pad = num_tiles * tile_m
    num_splits = 2 if (max_splits >= 2 and num_tiles % 2 == 0) else 1
    tiles_per_split = num_tiles // num_splits

    # Wrapper-side layout plumbing: NCHW -> channels-first flat (C, N*H*W).
    x_flat = jnp.transpose(x_nchw, (1, 0, 2, 3)).reshape(c_in, m_valid)
    if m_pad != m_valid:
        x_flat = jnp.pad(x_flat, ((0, 0), (0, m_pad - m_valid)))

    # Fold OIHW weights to per-tap matrices: tap t = kh*3 + kw -> (c_out, c_in).
    w1 = jnp.transpose(params["w1"], (2, 3, 0, 1)).reshape(9, c_out, c_in)
    w2 = jnp.transpose(params["w2"], (2, 3, 0, 1)).reshape(9, c_out, c_out)
    b1 = params["b1"].reshape(c_out, 1)
    b2 = params["b2"].reshape(c_out, 1)

    common = dict(height=height, width=width, tile_m=tile_m,
                  num_splits=num_splits, tiles_per_split=tiles_per_split,
                  m_valid=m_valid)

    # Stage 1: conv1 + batch stats (raw input, no input BN).
    one = jnp.ones((c_in, 1), jnp.float32)
    zero = jnp.zeros((c_in, 1), jnp.float32)
    y1, s1, q1 = _conv_stats_pass(x_flat, w1, b1, one, zero,
                                  apply_input_bn=False, **common)
    sc1, sh1 = _scale_shift(s1, q1, params["g1"], params["be1"], m_valid, eps)

    # Stage 2: BN1+ReLU fused into conv2's input prologue, conv2 + batch stats.
    y2, s2, q2 = _conv_stats_pass(y1, w2, b2, sc1, sh1,
                                  apply_input_bn=True, **common)
    sc2, sh2 = _scale_shift(s2, q2, params["g2"], params["be2"], m_valid, eps)

    # Final BN2 + ReLU (no further consumer to fuse into).
    out_flat = _bn_relu_pass(y2, sc2, sh2, tile_m=tile_m)
    if m_pad != m_valid:
        out_flat = out_flat[:, :m_valid]
    out = out_flat.reshape(c_out, n, height, width)
    return jnp.transpose(out, (1, 0, 2, 3))


def init_params(key, in_ch, out_ch):
    k1, k2, k3, k4 = jax.random.split(key, 4)
    return {
        # PyTorch OIHW conv weights
        "w1": 0.1 * jax.random.normal(k1, (out_ch, in_ch, 3, 3), jnp.float32),
        "b1": 0.05 * jax.random.normal(k2, (out_ch,), jnp.float32),
        "g1": jnp.ones((out_ch,), jnp.float32),    # BatchNorm default init
        "be1": jnp.zeros((out_ch,), jnp.float32),
        "w2": 0.1 * jax.random.normal(k3, (out_ch, out_ch, 3, 3), jnp.float32),
        "b2": 0.05 * jax.random.normal(k4, (out_ch,), jnp.float32),
        "g2": jnp.ones((out_ch,), jnp.float32),
        "be2": jnp.zeros((out_ch,), jnp.float32),
    }


def _reference_forward(x_nchw, params):
    """Plain-JAX reference (lax conv + batch-stat BN + ReLU) for verification."""
    def stage(x, w, b, g, be):
        y = jax.lax.conv_general_dilated(
            x, w, window_strides=(1, 1), padding=((1, 1), (1, 1)),
            dimension_numbers=("NCHW", "OIHW", "NCHW"))
        y = y + b.reshape(1, -1, 1, 1)
        mu = jnp.mean(y, axis=(0, 2, 3), keepdims=True)
        var = jnp.mean((y - mu) ** 2, axis=(0, 2, 3), keepdims=True)
        y = (y - mu) * jax.lax.rsqrt(var + EPS) * g.reshape(1, -1, 1, 1) \
            + be.reshape(1, -1, 1, 1)
        return jnp.maximum(y, 0.0)

    h = stage(x_nchw, params["w1"], params["b1"], params["g1"], params["be1"])
    h = stage(h, params["w2"], params["b2"], params["g2"], params["be2"])
    return h


if __name__ == "__main__":
    key = jax.random.PRNGKey(0)
    kx, kp = jax.random.split(key)

    N, in_ch, out_ch, H, W = 2, 4, 8, 16, 16
    x = jax.random.normal(kx, (N, in_ch, H, W), jnp.float32)   # NCHW like PyTorch
    params = init_params(kp, in_ch, out_ch)
    ref = _reference_forward(x, params)

    # Exercise three paths: single big tile, multi-tile stats accumulation,
    # and the 2-way ("parallel", v7x-megacore) per-split stats layout.
    configs = (dict(tile_m_target=4096, max_splits=2),
               dict(tile_m_target=256, max_splits=1),
               dict(tile_m_target=256, max_splits=2))
    out = None
    for cfg in configs:
        fwd = jax.jit(functools.partial(block_encoder_forward, **cfg))
        out = jax.block_until_ready(fwd(x, params))
        assert out.shape == (N, out_ch, H, W)
        assert jnp.allclose(out, ref, atol=2e-4, rtol=2e-4), \
            f"mismatch vs reference: {cfg}"

    print("KERNEL_OK")
</pallas_src>

<mosaic_0001>
module attributes {stable_mosaic.version = 11 : i64} {
  func.func @_conv_stats_kernel(%arg0: i32, %arg1: i32, %arg2: memref<8x512xf32, #tpu.memory_space<vmem>>, %arg3: memref<9x8x8xf32, #tpu.memory_space<vmem>>, %arg4: memref<8x1xf32, #tpu.memory_space<vmem>>, %arg5: memref<8x1xf32, #tpu.memory_space<vmem>>, %arg6: memref<8x1xf32, #tpu.memory_space<vmem>>, %arg7: memref<8x512xf32, #tpu.memory_space<vmem>>, %arg8: memref<1x8x1xf32, #tpu.memory_space<vmem>>, %arg9: memref<1x8x1xf32, #tpu.memory_space<vmem>>) attributes {dimension_semantics = [#tpu.dimension_semantics<parallel>, #tpu.dimension_semantics<arbitrary>], iteration_bounds = array<i64: 1, 1>, scalar_prefetch = 0 : i64, scratch_operands = 0 : i64, tpu.core_type = #tpu.core_type<tc>, window_params = [{transform_indices = @transform_0, window_bounds = array<i64: 8, 512>}, {pipeline_mode = #tpu.pipeline_mode<synchronous>, transform_indices = @transform_1, window_bounds = array<i64: 9, 8, 8>}, {pipeline_mode = #tpu.pipeline_mode<synchronous>, transform_indices = @transform_2, window_bounds = array<i64: 8, 1>}, {pipeline_mode = #tpu.pipeline_mode<synchronous>, transform_indices = @transform_3, window_bounds = array<i64: 8, 1>}, {pipeline_mode = #tpu.pipeline_mode<synchronous>, transform_indices = @transform_4, window_bounds = array<i64: 8, 1>}, {transform_indices = @transform_5, window_bounds = array<i64: 8, 512>}, {transform_indices = @transform_6, window_bounds = array<i64: 1, 8, 1>}, {transform_indices = @transform_7, window_bounds = array<i64: 1, 8, 1>}]} {
    %c0_i32 = arith.constant 0 : i32
    %0 = arith.cmpi eq, %arg1, %c0_i32 : i32
    %1 = arith.extui %0 : i1 to i32
    %c0_i32_0 = arith.constant 0 : i32
    %2 = arith.cmpi ne, %1, %c0_i32_0 : i32
    scf.if %2 {
      %cst_75 = arith.constant 0.000000e+00 : f32
      %139 = vector.broadcast %cst_75 : f32 to vector<8x1xf32>
      %c0_76 = arith.constant 0 : index
      %c0_77 = arith.constant 0 : index
      %c0_78 = arith.constant 0 : index
      %140 = vector.load %arg8[%c0_76, %c0_77, %c0_78] : memref<1x8x1xf32, #tpu.memory_space<vmem>>, vector<1x8x1xf32>
      %141 = vector.shape_cast %140 : vector<1x8x1xf32> to vector<8x1xf32>
      %142 = vector.shape_cast %139 : vector<8x1xf32> to vector<1x8x1xf32>
      tpu.vector_store %arg8[%c0_76, %c0_77, %c0_78], %142 {strides = array<i32>} : memref<1x8x1xf32, #tpu.memory_space<vmem>>, vector<1x8x1xf32>,
      %cst_79 = arith.constant 0.000000e+00 : f32
      %143 = vector.broadcast %cst_79 : f32 to vector<8x1xf32>
      %c0_80 = arith.constant 0 : index
      %c0_81 = arith.constant 0 : index
      %c0_82 = arith.constant 0 : index
      %144 = vector.load %arg9[%c0_80, %c0_81, %c0_82] : memref<1x8x1xf32, #tpu.memory_space<vmem>>, vector<1x8x1xf32>
      %145 = vector.shape_cast %144 : vector<1x8x1xf32> to vector<8x1xf32>
      %146 = vector.shape_cast %143 : vector<8x1xf32> to vector<1x8x1xf32>
      tpu.vector_store %arg9[%c0_80, %c0_81, %c0_82], %146 {strides = array<i32>} : memref<1x8x1xf32, #tpu.memory_space<vmem>>, vector<1x8x1xf32>,
    } else {
    }
    %c0 = arith.constant 0 : index
    %c0_1 = arith.constant 0 : index
    %3 = vector.load %arg2[%c0, %c0_1] : memref<8x512xf32, #tpu.memory_space<vmem>>, vector<8x512xf32>
    %c0_2 = arith.constant 0 : index
    %c0_3 = arith.constant 0 : index
    %4 = vector.load %arg5[%c0_2, %c0_3] : memref<8x1xf32, #tpu.memory_space<vmem>>, vector<8x1xf32>
    %5 = vector.broadcast %4 : vector<8x1xf32> to vector<8x512xf32>
    %6 = arith.mulf %3, %5 : vector<8x512xf32>
    %c0_4 = arith.constant 0 : index
    %c0_5 = arith.constant 0 : index
    %7 = vector.load %arg6[%c0_4, %c0_5] : memref<8x1xf32, #tpu.memory_space<vmem>>, vector<8x1xf32>
    %8 = vector.broadcast %7 : vector<8x1xf32> to vector<8x512xf32>
    %9 = arith.addf %6, %8 : vector<8x512xf32>
    %cst = arith.constant 0.000000e+00 : f32
    %10 = vector.broadcast %cst : f32 to vector<8x512xf32>
    %11 = arith.maximumf %9, %10 : vector<8x512xf32>
    %12 = tpu.iota {dimensions = array<i32: 1>} : vector<8x512xi32>
    %c256_i32 = arith.constant 256 : i32
    %c0_i32_6 = arith.constant 0 : i32
    %13 = arith.cmpi eq, %c256_i32, %c0_i32_6 : i32
    %c1_i32 = arith.constant 1 : i32
    %14 = arith.select %13, %c1_i32, %c256_i32 : i32
    %15 = vector.broadcast %14 : i32 to vector<8x512xi32>
    %16 = arith.remsi %12, %15 : vector<8x512xi32>
    %c0_i32_7 = arith.constant 0 : i32
    %17 = vector.broadcast %c0_i32_7 : i32 to vector<8x512xi32>
    %18 = arith.cmpi ne, %16, %17 : vector<8x512xi32>
    %c0_i32_8 = arith.constant 0 : i32
    %19 = vector.broadcast %c0_i32_8 : i32 to vector<8x512xi32>
    %20 = arith.cmpi slt, %16, %19 : vector<8x512xi32>
    %c0_i32_9 = arith.constant 0 : i32
    %21 = arith.cmpi slt, %14, %c0_i32_9 : i32
    %22 = vector.broadcast %21 : i1 to vector<8x512xi1>
    %23 = vector.broadcast %22 : vector<8x512xi1> to vector<8x512xi1>
    %24 = arith.xori %20, %23 : vector<8x512xi1>
    %25 = arith.andi %24, %18 : vector<8x512xi1>
    %26 = vector.broadcast %14 : i32 to vector<8x512xi32>
    %27 = arith.addi %16, %26 : vector<8x512xi32>
    %28 = arith.select %25, %27, %16 : vector<8x512xi1>, vector<8x512xi32>
    %c16_i32 = arith.constant 16 : i32
    %c0_i32_10 = arith.constant 0 : i32
    %29 = arith.cmpi eq, %c16_i32, %c0_i32_10 : i32
    %c1_i32_11 = arith.constant 1 : i32
    %30 = arith.select %29, %c1_i32_11, %c16_i32 : i32
    %31 = vector.broadcast %30 : i32 to vector<8x512xi32>
    %32 = arith.remsi %12, %31 : vector<8x512xi32>
    %c0_i32_12 = arith.constant 0 : i32
    %33 = vector.broadcast %c0_i32_12 : i32 to vector<8x512xi32>
    %34 = arith.cmpi ne, %32, %33 : vector<8x512xi32>
    %c0_i32_13 = arith.constant 0 : i32
    %35 = vector.broadcast %c0_i32_13 : i32 to vector<8x512xi32>
    %36 = arith.cmpi slt, %32, %35 : vector<8x512xi32>
    %c0_i32_14 = arith.constant 0 : i32
    %37 = arith.cmpi slt, %30, %c0_i32_14 : i32
    %38 = vector.broadcast %37 : i1 to vector<8x512xi1>
    %39 = vector.broadcast %38 : vector<8x512xi1> to vector<8x512xi1>
    %40 = arith.xori %36, %39 : vector<8x512xi1>
    %41 = arith.andi %40, %34 : vector<8x512xi1>
    %42 = vector.broadcast %30 : i32 to vector<8x512xi32>
    %43 = arith.addi %32, %42 : vector<8x512xi32>
    %44 = arith.select %41, %43, %32 : vector<8x512xi1>, vector<8x512xi32>
    %c16_i32_15 = arith.constant 16 : i32
    %45 = vector.broadcast %c16_i32_15 : i32 to vector<8x512xi32>
    %46 = arith.cmpi sge, %28, %45 : vector<8x512xi32>
    %c240_i32 = arith.constant 240 : i32
    %47 = vector.broadcast %c240_i32 : i32 to vector<8x512xi32>
    %48 = arith.cmpi slt, %28, %47 : vector<8x512xi32>
    %c1_i32_16 = arith.constant 1 : i32
    %49 = vector.broadcast %c1_i32_16 : i32 to vector<8x512xi32>
    %50 = arith.cmpi sge, %44, %49 : vector<8x512xi32>
    %c15_i32 = arith.constant 15 : i32
    %51 = vector.broadcast %c15_i32 : i32 to vector<8x512xi32>
    %52 = arith.cmpi slt, %44, %51 : vector<8x512xi32>
    %cst_17 = arith.constant 0.000000e+00 : f32
    %53 = vector.broadcast %cst_17 : f32 to vector<8x512xf32>
    %c17_i32 = arith.constant 17 : i32
    %54 = tpu.dynamic_rotate %11 by %c17_i32 dim 1 : vector<8x512xf32>, i32 -> vector<8x512xf32>
    %55 = arith.andi %46, %50 : vector<8x512xi1>
    %cst_18 = arith.constant 0.000000e+00 : f32
    %56 = vector.broadcast %cst_18 : f32 to vector<8x512xf32>
    %57 = arith.select %55, %54, %56 : vector<8x512xi1>, vector<8x512xf32>
    %c0_19 = arith.constant 0 : index
    %c0_20 = arith.constant 0 : index
    %c0_21 = arith.constant 0 : index
    %58 = vector.load %arg3[%c0_19, %c0_20, %c0_21] : memref<9x8x8xf32, #tpu.memory_space<vmem>>, vector<1x8x8xf32>
    %59 = vector.shape_cast %58 : vector<1x8x8xf32> to vector<8x8xf32>
    %cst_22 = arith.constant dense<0.000000e+00> : vector<8x512xf32>
    %60 = tpu.matmul %59, %57, %cst_22 {dimension_numbers = #tpu.dot_dimension_numbers<[1], [0], [0], [1], [0, 0, 1, 1], [], []>} : vector<8x8xf32>, vector<8x512xf32>, vector<8x512xf32> -> vector<8x512xf32>
    %61 = arith.addf %53, %60 : vector<8x512xf32>
    %c16_i32_23 = arith.constant 16 : i32
    %62 = tpu.dynamic_rotate %11 by %c16_i32_23 dim 1 : vector<8x512xf32>, i32 -> vector<8x512xf32>
    %cst_24 = arith.constant 0.000000e+00 : f32
    %63 = vector.broadcast %cst_24 : f32 to vector<8x512xf32>
    %64 = arith.select %46, %62, %63 : vector<8x512xi1>, vector<8x512xf32>
    %c1 = arith.constant 1 : index
    %c0_25 = arith.constant 0 : index
    %c0_26 = arith.constant 0 : index
    %65 = vector.load %arg3[%c1, %c0_25, %c0_26] : memref<9x8x8xf32, #tpu.memory_space<vmem>>, vector<1x8x8xf32>
    %66 = vector.shape_cast %65 : vector<1x8x8xf32> to vector<8x8xf32>
    %cst_27 = arith.constant dense<0.000000e+00> : vector<8x512xf32>
    %67 = tpu.matmul %66, %64, %cst_27 {dimension_numbers = #tpu.dot_dimension_numbers<[1], [0], [0], [1], [0, 0, 1, 1], [], []>} : vector<8x8xf32>, vector<8x512xf32>, vector<8x512xf32> -> vector<8x512xf32>
    %68 = arith.addf %61, %67 : vector<8x512xf32>
    %c15_i32_28 = arith.constant 15 : i32
    %69 = tpu.dynamic_rotate %11 by %c15_i32_28 dim 1 : vector<8x512xf32>, i32 -> vector<8x512xf32>
    %70 = arith.andi %46, %52 : vector<8x512xi1>
    %cst_29 = arith.constant 0.000000e+00 : f32
    %71 = vector.broadcast %cst_29 : f32 to vector<8x512xf32>
    %72 = arith.select %70, %69, %71 : vector<8x512xi1>, vector<8x512xf32>
    %c2 = arith.constant 2 : index
    %c0_30 = arith.constant 0 : index
    %c0_31 = arith.constant 0 : index
    %73 = vector.load %arg3[%c2, %c0_30, %c0_31] : memref<9x8x8xf32, #tpu.memory_space<vmem>>, vector<1x8x8xf32>
    %74 = vector.shape_cast %73 : vector<1x8x8xf32> to vector<8x8xf32>
    %cst_32 = arith.constant dense<0.000000e+00> : vector<8x512xf32>
    %75 = tpu.matmul %74, %72, %cst_32 {dimension_numbers = #tpu.dot_dimension_numbers<[1], [0], [0], [1], [0, 0, 1, 1], [], []>} : vector<8x8xf32>, vector<8x512xf32>, vector<8x512xf32> -> vector<8x512xf32>
    %76 = arith.addf %68, %75 : vector<8x512xf32>
    %c1_i32_33 = arith.constant 1 : i32
    %77 = tpu.dynamic_rotate %11 by %c1_i32_33 dim 1 : vector<8x512xf32>, i32 -> vector<8x512xf32>
    %cst_34 = arith.constant 0.000000e+00 : f32
    %78 = vector.broadcast %cst_34 : f32 to vector<8x512xf32>
    %79 = arith.select %50, %77, %78 : vector<8x512xi1>, vector<8x512xf32>
    %c3 = arith.constant 3 : index
    %c0_35 = arith.constant 0 : index
    %c0_36 = arith.constant 0 : index
    %80 = vector.load %arg3[%c3, %c0_35, %c0_36] : memref<9x8x8xf32, #tpu.memory_space<vmem>>, vector<1x8x8xf32>
    %81 = vector.shape_cast %80 : vector<1x8x8xf32> to vector<8x8xf32>
    %cst_37 = arith.constant dense<0.000000e+00> : vector<8x512xf32>
    %82 = tpu.matmul %81, %79, %cst_37 {dimension_numbers = #tpu.dot_dimension_numbers<[1], [0], [0], [1], [0, 0, 1, 1], [], []>} : vector<8x8xf32>, vector<8x512xf32>, vector<8x512xf32> -> vector<8x512xf32>
    %83 = arith.addf %76, %82 : vector<8x512xf32>
    %c4 = arith.constant 4 : index
    %c0_38 = arith.constant 0 : index
    %c0_39 = arith.constant 0 : index
    %84 = vector.load %arg3[%c4, %c0_38, %c0_39] : memref<9x8x8xf32, #tpu.memory_space<vmem>>, vector<1x8x8xf32>
    %85 = vector.shape_cast %84 : vector<1x8x8xf32> to vector<8x8xf32>
    %cst_40 = arith.constant dense<0.000000e+00> : vector<8x512xf32>
    %86 = tpu.matmul %85, %11, %cst_40 {dimension_numbers = #tpu.dot_dimension_numbers<[1], [0], [0], [1], [0, 0, 1, 1], [], []>} : vector<8x8xf32>, vector<8x512xf32>, vector<8x512xf32> -> vector<8x512xf32>
    %87 = arith.addf %83, %86 : vector<8x512xf32>
    %c511_i32 = arith.constant 511 : i32
    %88 = tpu.dynamic_rotate %11 by %c511_i32 dim 1 : vector<8x512xf32>, i32 -> vector<8x512xf32>
    %cst_41 = arith.constant 0.000000e+00 : f32
    %89 = vector.broadcast %cst_41 : f32 to vector<8x512xf32>
    %90 = arith.select %52, %88, %89 : vector<8x512xi1>, vector<8x512xf32>
    %c5 = arith.constant 5 : index
    %c0_42 = arith.constant 0 : index
    %c0_43 = arith.constant 0 : index
    %91 = vector.load %arg3[%c5, %c0_42, %c0_43] : memref<9x8x8xf32, #tpu.memory_space<vmem>>, vector<1x8x8xf32>
    %92 = vector.shape_cast %91 : vector<1x8x8xf32> to vector<8x8xf32>
    %cst_44 = arith.constant dense<0.000000e+00> : vector<8x512xf32>
    %93 = tpu.matmul %92, %90, %cst_44 {dimension_numbers = #tpu.dot_dimension_numbers<[1], [0], [0], [1], [0, 0, 1, 1], [], []>} : vector<8x8xf32>, vector<8x512xf32>, vector<8x512xf32> -> vector<8x512xf32>
    %94 = arith.addf %87, %93 : vector<8x512xf32>
    %c497_i32 = arith.constant 497 : i32
    %95 = tpu.dynamic_rotate %11 by %c497_i32 dim 1 : vector<8x512xf32>, i32 -> vector<8x512xf32>
    %96 = arith.andi %48, %50 : vector<8x512xi1>
    %cst_45 = arith.constant 0.000000e+00 : f32
    %97 = vector.broadcast %cst_45 : f32 to vector<8x512xf32>
    %98 = arith.select %96, %95, %97 : vector<8x512xi1>, vector<8x512xf32>
    %c6 = arith.constant 6 : index
    %c0_46 = arith.constant 0 : index
    %c0_47 = arith.constant 0 : index
    %99 = vector.load %arg3[%c6, %c0_46, %c0_47] : memref<9x8x8xf32, #tpu.memory_space<vmem>>, vector<1x8x8xf32>
    %100 = vector.shape_cast %99 : vector<1x8x8xf32> to vector<8x8xf32>
    %cst_48 = arith.constant dense<0.000000e+00> : vector<8x512xf32>
    %101 = tpu.matmul %100, %98, %cst_48 {dimension_numbers = #tpu.dot_dimension_numbers<[1], [0], [0], [1], [0, 0, 1, 1], [], []>} : vector<8x8xf32>, vector<8x512xf32>, vector<8x512xf32> -> vector<8x512xf32>
    %102 = arith.addf %94, %101 : vector<8x512xf32>
    %c496_i32 = arith.constant 496 : i32
    %103 = tpu.dynamic_rotate %11 by %c496_i32 dim 1 : vector<8x512xf32>, i32 -> vector<8x512xf32>
    %cst_49 = arith.constant 0.000000e+00 : f32
    %104 = vector.broadcast %cst_49 : f32 to vector<8x512xf32>
    %105 = arith.select %48, %103, %104 : vector<8x512xi1>, vector<8x512xf32>
    %c7 = arith.constant 7 : index
    %c0_50 = arith.constant 0 : index
    %c0_51 = arith.constant 0 : index
    %106 = vector.load %arg3[%c7, %c0_50, %c0_51] : memref<9x8x8xf32, #tpu.memory_space<vmem>>, vector<1x8x8xf32>
    %107 = vector.shape_cast %106 : vector<1x8x8xf32> to vector<8x8xf32>
    %cst_52 = arith.constant dense<0.000000e+00> : vector<8x512xf32>
    %108 = tpu.matmul %107, %105, %cst_52 {dimension_numbers = #tpu.dot_dimension_numbers<[1], [0], [0], [1], [0, 0, 1, 1], [], []>} : vector<8x8xf32>, vector<8x512xf32>, vector<8x512xf32> -> vector<8x512xf32>
    %109 = arith.addf %102, %108 : vector<8x512xf32>
    %c495_i32 = arith.constant 495 : i32
    %110 = tpu.dynamic_rotate %11 by %c495_i32 dim 1 : vector<8x512xf32>, i32 -> vector<8x512xf32>
    %111 = arith.andi %48, %52 : vector<8x512xi1>
    %cst_53 = arith.constant 0.000000e+00 : f32
    %112 = vector.broadcast %cst_53 : f32 to vector<8x512xf32>
    %113 = arith.select %111, %110, %112 : vector<8x512xi1>, vector<8x512xf32>
    %c8 = arith.constant 8 : index
    %c0_54 = arith.constant 0 : index
    %c0_55 = arith.constant 0 : index
    %114 = vector.load %arg3[%c8, %c0_54, %c0_55] : memref<9x8x8xf32, #tpu.memory_space<vmem>>, vector<1x8x8xf32>
    %115 = vector.shape_cast %114 : vector<1x8x8xf32> to vector<8x8xf32>
    %cst_56 = arith.constant dense<0.000000e+00> : vector<8x512xf32>
    %116 = tpu.matmul %115, %113, %cst_56 {dimension_numbers = #tpu.dot_dimension_numbers<[1], [0], [0], [1], [0, 0, 1, 1], [], []>} : vector<8x8xf32>, vector<8x512xf32>, vector<8x512xf32> -> vector<8x512xf32>
    %117 = arith.addf %109, %116 : vector<8x512xf32>
    %c0_57 = arith.constant 0 : index
    %c0_58 = arith.constant 0 : index
    %118 = vector.load %arg4[%c0_57, %c0_58] : memref<8x1xf32, #tpu.memory_space<vmem>>, vector<8x1xf32>
    %119 = vector.broadcast %118 : vector<8x1xf32> to vector<8x512xf32>
    %120 = arith.addf %117, %119 : vector<8x512xf32>
    %c0_59 = arith.constant 0 : index
    %c0_60 = arith.constant 0 : index
    %121 = vector.load %arg7[%c0_59, %c0_60] : memref<8x512xf32, #tpu.memory_space<vmem>>, vector<8x512xf32>
    tpu.vector_store %arg7[%c0_59, %c0_60], %120 {strides = array<i32>} : memref<8x512xf32, #tpu.memory_space<vmem>>, vector<8x512xf32>,
    %c0_61 = arith.constant 0 : index
    %c0_62 = arith.constant 0 : index
    %c0_63 = arith.constant 0 : index
    %122 = vector.load %arg8[%c0_61, %c0_62, %c0_63] : memref<1x8x1xf32, #tpu.memory_space<vmem>>, vector<1x8x1xf32>
    %123 = vector.shape_cast %122 : vector<1x8x1xf32> to vector<8x1xf32>
    %cst_64 = arith.constant dense<0.000000e+00> : vector<8xf32>
    %124 = vector.multi_reduction <add>, %120, %cst_64 [1] : vector<8x512xf32> to vector<8xf32>
    %125 = vector.shape_cast %124 : vector<8xf32> to vector<8x1xf32>
    %126 = arith.addf %123, %125 : vector<8x1xf32>
    %c0_65 = arith.constant 0 : index
    %c0_66 = arith.constant 0 : index
    %c0_67 = arith.constant 0 : index
    %127 = vector.load %arg8[%c0_65, %c0_66, %c0_67] : memref<1x8x1xf32, #tpu.memory_space<vmem>>, vector<1x8x1xf32>
    %128 = vector.shape_cast %127 : vector<1x8x1xf32> to vector<8x1xf32>
    %129 = vector.shape_cast %126 : vector<8x1xf32> to vector<1x8x1xf32>
    tpu.vector_store %arg8[%c0_65, %c0_66, %c0_67], %129 {strides = array<i32>} : memref<1x8x1xf32, #tpu.memory_space<vmem>>, vector<1x8x1xf32>,
    %c0_68 = arith.constant 0 : index
    %c0_69 = arith.constant 0 : index
    %c0_70 = arith.constant 0 : index
    %130 = vector.load %arg9[%c0_68, %c0_69, %c0_70] : memref<1x8x1xf32, #tpu.memory_space<vmem>>, vector<1x8x1xf32>
    %131 = vector.shape_cast %130 : vector<1x8x1xf32> to vector<8x1xf32>
    %132 = arith.mulf %120, %120 : vector<8x512xf32>
    %cst_71 = arith.constant dense<0.000000e+00> : vector<8xf32>
    %133 = vector.multi_reduction <add>, %132, %cst_71 [1] : vector<8x512xf32> to vector<8xf32>
    %134 = vector.shape_cast %133 : vector<8xf32> to vector<8x1xf32>
    %135 = arith.addf %131, %134 : vector<8x1xf32>
    %c0_72 = arith.constant 0 : index
    %c0_73 = arith.constant 0 : index
    %c0_74 = arith.constant 0 : index
    %136 = vector.load %arg9[%c0_72, %c0_73, %c0_74] : memref<1x8x1xf32, #tpu.memory_space<vmem>>, vector<1x8x1xf32>
    %137 = vector.shape_cast %136 : vector<1x8x1xf32> to vector<8x1xf32>
    %138 = vector.shape_cast %135 : vector<8x1xf32> to vector<1x8x1xf32>
    tpu.vector_store %arg9[%c0_72, %c0_73, %c0_74], %138 {strides = array<i32>} : memref<1x8x1xf32, #tpu.memory_space<vmem>>, vector<1x8x1xf32>,
    return
  }
  func.func @transform_0(%arg0: i32, %arg1: i32) -> (i32, i32) {
    %c1_i32 = arith.constant 1 : i32
    %0 = arith.muli %arg0, %c1_i32 : i32
    %1 = arith.addi %0, %arg1 : i32
    %c0_i32 = arith.constant 0 : i32
    %c0_i32_0 = arith.constant 0 : i32
    return %c0_i32, %1 : i32, i32
  }
  func.func @transform_1(%arg0: i32, %arg1: i32) -> (i32, i32, i32) {
    %c0_i32 = arith.constant 0 : i32
    %c0_i32_0 = arith.constant 0 : i32
    %c0_i32_1 = arith.constant 0 : i32
    %c0_i32_2 = arith.constant 0 : i32
    return %c0_i32, %c0_i32_0, %c0_i32_1 : i32, i32, i32
  }
  func.func @transform_2(%arg0: i32, %arg1: i32) -> (i32, i32) {
    %c0_i32 = arith.constant 0 : i32
    %c0_i32_0 = arith.constant 0 : i32
    %c0_i32_1 = arith.constant 0 : i32
    return %c0_i32, %c0_i32_0 : i32, i32
  }
  func.func @transform_3(%arg0: i32, %arg1: i32) -> (i32, i32) {
    %c0_i32 = arith.constant 0 : i32
    %c0_i32_0 = arith.constant 0 : i32
    %c0_i32_1 = arith.constant 0 : i32
    return %c0_i32, %c0_i32_0 : i32, i32
  }
  func.func @transform_4(%arg0: i32, %arg1: i32) -> (i32, i32) {
    %c0_i32 = arith.constant 0 : i32
    %c0_i32_0 = arith.constant 0 : i32
    %c0_i32_1 = arith.constant 0 : i32
    return %c0_i32, %c0_i32_0 : i32, i32
  }
  func.func @transform_5(%arg0: i32, %arg1: i32) -> (i32, i32) {
    %c1_i32 = arith.constant 1 : i32
    %0 = arith.muli %arg0, %c1_i32 : i32
    %1 = arith.addi %0, %arg1 : i32
    %c0_i32 = arith.constant 0 : i32
    %c0_i32_0 = arith.constant 0 : i32
    return %c0_i32, %1 : i32, i32
  }
  func.func @transform_6(%arg0: i32, %arg1: i32) -> (i32, i32, i32) {
    %c0_i32 = arith.constant 0 : i32
    %c0_i32_0 = arith.constant 0 : i32
    %c0_i32_1 = arith.constant 0 : i32
    return %arg0, %c0_i32, %c0_i32_0 : i32, i32, i32
  }
  func.func @transform_7(%arg0: i32, %arg1: i32) -> (i32, i32, i32) {
    %c0_i32 = arith.constant 0 : i32
    %c0_i32_0 = arith.constant 0 : i32
    %c0_i32_1 = arith.constant 0 : i32
    return %arg0, %c0_i32, %c0_i32_0 : i32, i32, i32
  }
}

module attributes {stable_mosaic.version = 11 : i64} {
  func.func @_bn_relu_kernel(%arg0: i32, %arg1: memref<8x1xf32, #tpu.memory_space<vmem>>, %arg2: memref<8x1xf32, #tpu.memory_space<vmem>>, %arg3: memref<8x512xf32, #tpu.memory_space<vmem>>, %arg4: memref<8x512xf32, #tpu.memory_space<vmem>>) attributes {dimension_semantics = [#tpu.dimension_semantics<parallel>], iteration_bounds = array<i64: 1>, scalar_prefetch = 0 : i64, scratch_operands = 0 : i64, tpu.core_type = #tpu.core_type<tc>, window_params = [{pipeline_mode = #tpu.pipeline_mode<synchronous>, transform_indices = @transform_0, window_bounds = array<i64: 8, 1>}, {pipeline_mode = #tpu.pipeline_mode<synchronous>, transform_indices = @transform_1, window_bounds = array<i64: 8, 1>}, {transform_indices = @transform_2, window_bounds = array<i64: 8, 512>}, {transform_indices = @transform_3, window_bounds = array<i64: 8, 512>}]} {
    %c0 = arith.constant 0 : index
    %c0_0 = arith.constant 0 : index
    %0 = vector.load %arg3[%c0, %c0_0] : memref<8x512xf32, #tpu.memory_space<vmem>>, vector<8x512xf32>
    %c0_1 = arith.constant 0 : index
    %c0_2 = arith.constant 0 : index
    %1 = vector.load %arg1[%c0_1, %c0_2] : memref<8x1xf32, #tpu.memory_space<vmem>>, vector<8x1xf32>
    %2 = vector.broadcast %1 : vector<8x1xf32> to vector<8x512xf32>
    %3 = arith.mulf %0, %2 : vector<8x512xf32>
    %c0_3 = arith.constant 0 : index
    %c0_4 = arith.constant 0 : index
    %4 = vector.load %arg2[%c0_3, %c0_4] : memref<8x1xf32, #tpu.memory_space<vmem>>, vector<8x1xf32>
    %5 = vector.broadcast %4 : vector<8x1xf32> to vector<8x512xf32>
    %6 = arith.addf %3, %5 : vector<8x512xf32>
    %cst = arith.constant 0.000000e+00 : f32
    %7 = vector.broadcast %cst : f32 to vector<8x512xf32>
    %8 = arith.maximumf %6, %7 : vector<8x512xf32>
    %c0_5 = arith.constant 0 : index
    %c0_6 = arith.constant 0 : index
    %9 = vector.load %arg4[%c0_5, %c0_6] : memref<8x512xf32, #tpu.memory_space<vmem>>, vector<8x512xf32>
    tpu.vector_store %arg4[%c0_5, %c0_6], %8 {strides = array<i32>} : memref<8x512xf32, #tpu.memory_space<vmem>>, vector<8x512xf32>,
    return
  }
  func.func @transform_0(%arg0: i32) -> (i32, i32) {
    %c0_i32 = arith.constant 0 : i32
    %c0_i32_0 = arith.constant 0 : i32
    %c0_i32_1 = arith.constant 0 : i32
    return %c0_i32, %c0_i32_0 : i32, i32
  }
  func.func @transform_1(%arg0: i32) -> (i32, i32) {
    %c0_i32 = arith.constant 0 : i32
    %c0_i32_0 = arith.constant 0 : i32
    %c0_i32_1 = arith.constant 0 : i32
    return %c0_i32, %c0_i32_0 : i32, i32
  }
  func.func @transform_2(%arg0: i32) -> (i32, i32) {
    %c0_i32 = arith.constant 0 : i32
    %c0_i32_0 = arith.constant 0 : i32
    return %c0_i32, %arg0 : i32, i32
  }
  func.func @transform_3(%arg0: i32) -> (i32, i32) {
    %c0_i32 = arith.constant 0 : i32
    %c0_i32_0 = arith.constant 0 : i32
    return %c0_i32, %arg0 : i32, i32
  }
}

module attributes {stable_mosaic.version = 11 : i64} {
  func.func @_conv_stats_kernel(%arg0: i32, %arg1: i32, %arg2: memref<4x512xf32, #tpu.memory_space<vmem>>, %arg3: memref<9x8x4xf32, #tpu.memory_space<vmem>>, %arg4: memref<8x1xf32, #tpu.memory_space<vmem>>, %arg5: memref<4x1xf32, #tpu.memory_space<vmem>>, %arg6: memref<4x1xf32, #tpu.memory_space<vmem>>, %arg7: memref<8x512xf32, #tpu.memory_space<vmem>>, %arg8: memref<1x8x1xf32, #tpu.memory_space<vmem>>, %arg9: memref<1x8x1xf32, #tpu.memory_space<vmem>>) attributes {dimension_semantics = [#tpu.dimension_semantics<parallel>, #tpu.dimension_semantics<arbitrary>], iteration_bounds = array<i64: 1, 1>, scalar_prefetch = 0 : i64, scratch_operands = 0 : i64, tpu.core_type = #tpu.core_type<tc>, window_params = [{transform_indices = @transform_0, window_bounds = array<i64: 4, 512>}, {pipeline_mode = #tpu.pipeline_mode<synchronous>, transform_indices = @transform_1, window_bounds = array<i64: 9, 8, 4>}, {pipeline_mode = #tpu.pipeline_mode<synchronous>, transform_indices = @transform_2, window_bounds = array<i64: 8, 1>}, {pipeline_mode = #tpu.pipeline_mode<synchronous>, transform_indices = @transform_3, window_bounds = array<i64: 4, 1>}, {pipeline_mode = #tpu.pipeline_mode<synchronous>, transform_indices = @transform_4, window_bounds = array<i64: 4, 1>}, {transform_indices = @transform_5, window_bounds = array<i64: 8, 512>}, {transform_indices = @transform_6, window_bounds = array<i64: 1, 8, 1>}, {transform_indices = @transform_7, window_bounds = array<i64: 1, 8, 1>}]} {
    %c0_i32 = arith.constant 0 : i32
    %0 = arith.cmpi eq, %arg1, %c0_i32 : i32
    %1 = arith.extui %0 : i1 to i32
    %c0_i32_0 = arith.constant 0 : i32
    %2 = arith.cmpi ne, %1, %c0_i32_0 : i32
    scf.if %2 {
      %cst_70 = arith.constant 0.000000e+00 : f32
      %131 = vector.broadcast %cst_70 : f32 to vector<8x1xf32>
      %c0_71 = arith.constant 0 : index
      %c0_72 = arith.constant 0 : index
      %c0_73 = arith.constant 0 : index
      %132 = vector.load %arg8[%c0_71, %c0_72, %c0_73] : memref<1x8x1xf32, #tpu.memory_space<vmem>>, vector<1x8x1xf32>
      %133 = vector.shape_cast %132 : vector<1x8x1xf32> to vector<8x1xf32>
      %134 = vector.shape_cast %131 : vector<8x1xf32> to vector<1x8x1xf32>
      tpu.vector_store %arg8[%c0_71, %c0_72, %c0_73], %134 {strides = array<i32>} : memref<1x8x1xf32, #tpu.memory_space<vmem>>, vector<1x8x1xf32>,
      %cst_74 = arith.constant 0.000000e+00 : f32
      %135 = vector.broadcast %cst_74 : f32 to vector<8x1xf32>
      %c0_75 = arith.constant 0 : index
      %c0_76 = arith.constant 0 : index
      %c0_77 = arith.constant 0 : index
      %136 = vector.load %arg9[%c0_75, %c0_76, %c0_77] : memref<1x8x1xf32, #tpu.memory_space<vmem>>, vector<1x8x1xf32>
      %137 = vector.shape_cast %136 : vector<1x8x1xf32> to vector<8x1xf32>
      %138 = vector.shape_cast %135 : vector<8x1xf32> to vector<1x8x1xf32>
      tpu.vector_store %arg9[%c0_75, %c0_76, %c0_77], %138 {strides = array<i32>} : memref<1x8x1xf32, #tpu.memory_space<vmem>>, vector<1x8x1xf32>,
    } else {
    }
    %c0 = arith.constant 0 : index
    %c0_1 = arith.constant 0 : index
    %3 = vector.load %arg2[%c0, %c0_1] : memref<4x512xf32, #tpu.memory_space<vmem>>, vector<4x512xf32>
    %4 = tpu.iota {dimensions = array<i32: 1>} : vector<4x512xi32>
    %c256_i32 = arith.constant 256 : i32
    %c0_i32_2 = arith.constant 0 : i32
    %5 = arith.cmpi eq, %c256_i32, %c0_i32_2 : i32
    %c1_i32 = arith.constant 1 : i32
    %6 = arith.select %5, %c1_i32, %c256_i32 : i32
    %7 = vector.broadcast %6 : i32 to vector<4x512xi32>
    %8 = arith.remsi %4, %7 : vector<4x512xi32>
    %c0_i32_3 = arith.constant 0 : i32
    %9 = vector.broadcast %c0_i32_3 : i32 to vector<4x512xi32>
    %10 = arith.cmpi ne, %8, %9 : vector<4x512xi32>
    %c0_i32_4 = arith.constant 0 : i32
    %11 = vector.broadcast %c0_i32_4 : i32 to vector<4x512xi32>
    %12 = arith.cmpi slt, %8, %11 : vector<4x512xi32>
    %c0_i32_5 = arith.constant 0 : i32
    %13 = arith.cmpi slt, %6, %c0_i32_5 : i32
    %14 = vector.broadcast %13 : i1 to vector<4x512xi1>
    %15 = vector.broadcast %14 : vector<4x512xi1> to vector<4x512xi1>
    %16 = arith.xori %12, %15 : vector<4x512xi1>
    %17 = arith.andi %16, %10 : vector<4x512xi1>
    %18 = vector.broadcast %6 : i32 to vector<4x512xi32>
    %19 = arith.addi %8, %18 : vector<4x512xi32>
    %20 = arith.select %17, %19, %8 : vector<4x512xi1>, vector<4x512xi32>
    %c16_i32 = arith.constant 16 : i32
    %c0_i32_6 = arith.constant 0 : i32
    %21 = arith.cmpi eq, %c16_i32, %c0_i32_6 : i32
    %c1_i32_7 = arith.constant 1 : i32
    %22 = arith.select %21, %c1_i32_7, %c16_i32 : i32
    %23 = vector.broadcast %22 : i32 to vector<4x512xi32>
    %24 = arith.remsi %4, %23 : vector<4x512xi32>
    %c0_i32_8 = arith.constant 0 : i32
    %25 = vector.broadcast %c0_i32_8 : i32 to vector<4x512xi32>
    %26 = arith.cmpi ne, %24, %25 : vector<4x512xi32>
    %c0_i32_9 = arith.constant 0 : i32
    %27 = vector.broadcast %c0_i32_9 : i32 to vector<4x512xi32>
    %28 = arith.cmpi slt, %24, %27 : vector<4x512xi32>
    %c0_i32_10 = arith.constant 0 : i32
    %29 = arith.cmpi slt, %22, %c0_i32_10 : i32
    %30 = vector.broadcast %29 : i1 to vector<4x512xi1>
    %31 = vector.broadcast %30 : vector<4x512xi1> to vector<4x512xi1>
    %32 = arith.xori %28, %31 : vector<4x512xi1>
    %33 = arith.andi %32, %26 : vector<4x512xi1>
    %34 = vector.broadcast %22 : i32 to vector<4x512xi32>
    %35 = arith.addi %24, %34 : vector<4x512xi32>
    %36 = arith.select %33, %35, %24 : vector<4x512xi1>, vector<4x512xi32>
    %c16_i32_11 = arith.constant 16 : i32
    %37 = vector.broadcast %c16_i32_11 : i32 to vector<4x512xi32>
    %38 = arith.cmpi sge, %20, %37 : vector<4x512xi32>
    %c240_i32 = arith.constant 240 : i32
    %39 = vector.broadcast %c240_i32 : i32 to vector<4x512xi32>
    %40 = arith.cmpi slt, %20, %39 : vector<4x512xi32>
    %c1_i32_12 = arith.constant 1 : i32
    %41 = vector.broadcast %c1_i32_12 : i32 to vector<4x512xi32>
    %42 = arith.cmpi sge, %36, %41 : vector<4x512xi32>
    %c15_i32 = arith.constant 15 : i32
    %43 = vector.broadcast %c15_i32 : i32 to vector<4x512xi32>
    %44 = arith.cmpi slt, %36, %43 : vector<4x512xi32>
    %cst = arith.constant 0.000000e+00 : f32
    %45 = vector.broadcast %cst : f32 to vector<8x512xf32>
    %c17_i32 = arith.constant 17 : i32
    %46 = tpu.dynamic_rotate %3 by %c17_i32 dim 1 : vector<4x512xf32>, i32 -> vector<4x512xf32>
    %47 = arith.andi %38, %42 : vector<4x512xi1>
    %cst_13 = arith.constant 0.000000e+00 : f32
    %48 = vector.broadcast %cst_13 : f32 to vector<4x512xf32>
    %49 = arith.select %47, %46, %48 : vector<4x512xi1>, vector<4x512xf32>
    %c0_14 = arith.constant 0 : index
    %c0_15 = arith.constant 0 : index
    %c0_16 = arith.constant 0 : index
    %50 = vector.load %arg3[%c0_14, %c0_15, %c0_16] : memref<9x8x4xf32, #tpu.memory_space<vmem>>, vector<1x8x4xf32>
    %51 = vector.shape_cast %50 : vector<1x8x4xf32> to vector<8x4xf32>
    %cst_17 = arith.constant dense<0.000000e+00> : vector<8x512xf32>
    %52 = tpu.matmul %51, %49, %cst_17 {dimension_numbers = #tpu.dot_dimension_numbers<[1], [0], [0], [1], [0, 0, 1, 1], [], []>} : vector<8x4xf32>, vector<4x512xf32>, vector<8x512xf32> -> vector<8x512xf32>
    %53 = arith.addf %45, %52 : vector<8x512xf32>
    %c16_i32_18 = arith.constant 16 : i32
    %54 = tpu.dynamic_rotate %3 by %c16_i32_18 dim 1 : vector<4x512xf32>, i32 -> vector<4x512xf32>
    %cst_19 = arith.constant 0.000000e+00 : f32
    %55 = vector.broadcast %cst_19 : f32 to vector<4x512xf32>
    %56 = arith.select %38, %54, %55 : vector<4x512xi1>, vector<4x512xf32>
    %c1 = arith.constant 1 : index
    %c0_20 = arith.constant 0 : index
    %c0_21 = arith.constant 0 : index
    %57 = vector.load %arg3[%c1, %c0_20, %c0_21] : memref<9x8x4xf32, #tpu.memory_space<vmem>>, vector<1x8x4xf32>
    %58 = vector.shape_cast %57 : vector<1x8x4xf32> to vector<8x4xf32>
    %cst_22 = arith.constant dense<0.000000e+00> : vector<8x512xf32>
    %59 = tpu.matmul %58, %56, %cst_22 {dimension_numbers = #tpu.dot_dimension_numbers<[1], [0], [0], [1], [0, 0, 1, 1], [], []>} : vector<8x4xf32>, vector<4x512xf32>, vector<8x512xf32> -> vector<8x512xf32>
    %60 = arith.addf %53, %59 : vector<8x512xf32>
    %c15_i32_23 = arith.constant 15 : i32
    %61 = tpu.dynamic_rotate %3 by %c15_i32_23 dim 1 : vector<4x512xf32>, i32 -> vector<4x512xf32>
    %62 = arith.andi %38, %44 : vector<4x512xi1>
    %cst_24 = arith.constant 0.000000e+00 : f32
    %63 = vector.broadcast %cst_24 : f32 to vector<4x512xf32>
    %64 = arith.select %62, %61, %63 : vector<4x512xi1>, vector<4x512xf32>
    %c2 = arith.constant 2 : index
    %c0_25 = arith.constant 0 : index
    %c0_26 = arith.constant 0 : index
    %65 = vector.load %arg3[%c2, %c0_25, %c0_26] : memref<9x8x4xf32, #tpu.memory_space<vmem>>, vector<1x8x4xf32>
    %66 = vector.shape_cast %65 : vector<1x8x4xf32> to vector<8x4xf32>
    %cst_27 = arith.constant dense<0.000000e+00> : vector<8x512xf32>
    %67 = tpu.matmul %66, %64, %cst_27 {dimension_numbers = #tpu.dot_dimension_numbers<[1], [0], [0], [1], [0, 0, 1, 1], [], []>} : vector<8x4xf32>, vector<4x512xf32>, vector<8x512xf32> -> vector<8x512xf32>
    %68 = arith.addf %60, %67 : vector<8x512xf32>
    %c1_i32_28 = arith.constant 1 : i32
    %69 = tpu.dynamic_rotate %3 by %c1_i32_28 dim 1 : vector<4x512xf32>, i32 -> vector<4x512xf32>
    %cst_29 = arith.constant 0.000000e+00 : f32
    %70 = vector.broadcast %cst_29 : f32 to vector<4x512xf32>
    %71 = arith.select %42, %69, %70 : vector<4x512xi1>, vector<4x512xf32>
    %c3 = arith.constant 3 : index
    %c0_30 = arith.constant 0 : index
    %c0_31 = arith.constant 0 : index
    %72 = vector.load %arg3[%c3, %c0_30, %c0_31] : memref<9x8x4xf32, #tpu.memory_space<vmem>>, vector<1x8x4xf32>
    %73 = vector.shape_cast %72 : vector<1x8x4xf32> to vector<8x4xf32>
    %cst_32 = arith.constant dense<0.000000e+00> : vector<8x512xf32>
    %74 = tpu.matmul %73, %71, %cst_32 {dimension_numbers = #tpu.dot_dimension_numbers<[1], [0], [0], [1], [0, 0, 1, 1], [], []>} : vector<8x4xf32>, vector<4x512xf32>, vector<8x512xf32> -> vector<8x512xf32>
    %75 = arith.addf %68, %74 : vector<8x512xf32>
    %c4 = arith.constant 4 : index
    %c0_33 = arith.constant 0 : index
    %c0_34 = arith.constant 0 : index
    %76 = vector.load %arg3[%c4, %c0_33, %c0_34] : memref<9x8x4xf32, #tpu.memory_space<vmem>>, vector<1x8x4xf32>
    %77 = vector.shape_cast %76 : vector<1x8x4xf32> to vector<8x4xf32>
    %cst_35 = arith.constant dense<0.000000e+00> : vector<8x512xf32>
    %78 = tpu.matmul %77, %3, %cst_35 {dimension_numbers = #tpu.dot_dimension_numbers<[1], [0], [0], [1], [0, 0, 1, 1], [], []>} : vector<8x4xf32>, vector<4x512xf32>, vector<8x512xf32> -> vector<8x512xf32>
    %79 = arith.addf %75, %78 : vector<8x512xf32>
    %c511_i32 = arith.constant 511 : i32
    %80 = tpu.dynamic_rotate %3 by %c511_i32 dim 1 : vector<4x512xf32>, i32 -> vector<4x512xf32>
    %cst_36 = arith.constant 0.000000e+00 : f32
    %81 = vector.broadcast %cst_36 : f32 to vector<4x512xf32>
    %82 = arith.select %44, %80, %81 : vector<4x512xi1>, vector<4x512xf32>
    %c5 = arith.constant 5 : index
    %c0_37 = arith.constant 0 : index
    %c0_38 = arith.constant 0 : index
    %83 = vector.load %arg3[%c5, %c0_37, %c0_38] : memref<9x8x4xf32, #tpu.memory_space<vmem>>, vector<1x8x4xf32>
    %84 = vector.shape_cast %83 : vector<1x8x4xf32> to vector<8x4xf32>
    %cst_39 = arith.constant dense<0.000000e+00> : vector<8x512xf32>
    %85 = tpu.matmul %84, %82, %cst_39 {dimension_numbers = #tpu.dot_dimension_numbers<[1], [0], [0], [1], [0, 0, 1, 1], [], []>} : vector<8x4xf32>, vector<4x512xf32>, vector<8x512xf32> -> vector<8x512xf32>
    %86 = arith.addf %79, %85 : vector<8x512xf32>
    %c497_i32 = arith.constant 497 : i32
    %87 = tpu.dynamic_rotate %3 by %c497_i32 dim 1 : vector<4x512xf32>, i32 -> vector<4x512xf32>
    %88 = arith.andi %40, %42 : vector<4x512xi1>
    %cst_40 = arith.constant 0.000000e+00 : f32
    %89 = vector.broadcast %cst_40 : f32 to vector<4x512xf32>
    %90 = arith.select %88, %87, %89 : vector<4x512xi1>, vector<4x512xf32>
    %c6 = arith.constant 6 : index
    %c0_41 = arith.constant 0 : index
    %c0_42 = arith.constant 0 : index
    %91 = vector.load %arg3[%c6, %c0_41, %c0_42] : memref<9x8x4xf32, #tpu.memory_space<vmem>>, vector<1x8x4xf32>
    %92 = vector.shape_cast %91 : vector<1x8x4xf32> to vector<8x4xf32>
    %cst_43 = arith.constant dense<0.000000e+00> : vector<8x512xf32>
    %93 = tpu.matmul %92, %90, %cst_43 {dimension_numbers = #tpu.dot_dimension_numbers<[1], [0], [0], [1], [0, 0, 1, 1], [], []>} : vector<8x4xf32>, vector<4x512xf32>, vector<8x512xf32> -> vector<8x512xf32>
    %94 = arith.addf %86, %93 : vector<8x512xf32>
    %c496_i32 = arith.constant 496 : i32
    %95 = tpu.dynamic_rotate %3 by %c496_i32 dim 1 : vector<4x512xf32>, i32 -> vector<4x512xf32>
    %cst_44 = arith.constant 0.000000e+00 : f32
    %96 = vector.broadcast %cst_44 : f32 to vector<4x512xf32>
    %97 = arith.select %40, %95, %96 : vector<4x512xi1>, vector<4x512xf32>
    %c7 = arith.constant 7 : index
    %c0_45 = arith.constant 0 : index
    %c0_46 = arith.constant 0 : index
    %98 = vector.load %arg3[%c7, %c0_45, %c0_46] : memref<9x8x4xf32, #tpu.memory_space<vmem>>, vector<1x8x4xf32>
    %99 = vector.shape_cast %98 : vector<1x8x4xf32> to vector<8x4xf32>
    %cst_47 = arith.constant dense<0.000000e+00> : vector<8x512xf32>
    %100 = tpu.matmul %99, %97, %cst_47 {dimension_numbers = #tpu.dot_dimension_numbers<[1], [0], [0], [1], [0, 0, 1, 1], [], []>} : vector<8x4xf32>, vector<4x512xf32>, vector<8x512xf32> -> vector<8x512xf32>
    %101 = arith.addf %94, %100 : vector<8x512xf32>
    %c495_i32 = arith.constant 495 : i32
    %102 = tpu.dynamic_rotate %3 by %c495_i32 dim 1 : vector<4x512xf32>, i32 -> vector<4x512xf32>
    %103 = arith.andi %40, %44 : vector<4x512xi1>
    %cst_48 = arith.constant 0.000000e+00 : f32
    %104 = vector.broadcast %cst_48 : f32 to vector<4x512xf32>
    %105 = arith.select %103, %102, %104 : vector<4x512xi1>, vector<4x512xf32>
    %c8 = arith.constant 8 : index
    %c0_49 = arith.constant 0 : index
    %c0_50 = arith.constant 0 : index
    %106 = vector.load %arg3[%c8, %c0_49, %c0_50] : memref<9x8x4xf32, #tpu.memory_space<vmem>>, vector<1x8x4xf32>
    %107 = vector.shape_cast %106 : vector<1x8x4xf32> to vector<8x4xf32>
    %cst_51 = arith.constant dense<0.000000e+00> : vector<8x512xf32>
    %108 = tpu.matmul %107, %105, %cst_51 {dimension_numbers = #tpu.dot_dimension_numbers<[1], [0], [0], [1], [0, 0, 1, 1], [], []>} : vector<8x4xf32>, vector<4x512xf32>, vector<8x512xf32> -> vector<8x512xf32>
    %109 = arith.addf %101, %108 : vector<8x512xf32>
    %c0_52 = arith.constant 0 : index
    %c0_53 = arith.constant 0 : index
    %110 = vector.load %arg4[%c0_52, %c0_53] : memref<8x1xf32, #tpu.memory_space<vmem>>, vector<8x1xf32>
    %111 = vector.broadcast %110 : vector<8x1xf32> to vector<8x512xf32>
    %112 = arith.addf %109, %111 : vector<8x512xf32>
    %c0_54 = arith.constant 0 : index
    %c0_55 = arith.constant 0 : index
    %113 = vector.load %arg7[%c0_54, %c0_55] : memref<8x512xf32, #tpu.memory_space<vmem>>, vector<8x512xf32>
    tpu.vector_store %arg7[%c0_54, %c0_55], %112 {strides = array<i32>} : memref<8x512xf32, #tpu.memory_space<vmem>>, vector<8x512xf32>,
    %c0_56 = arith.constant 0 : index
    %c0_57 = arith.constant 0 : index
    %c0_58 = arith.constant 0 : index
    %114 = vector.load %arg8[%c0_56, %c0_57, %c0_58] : memref<1x8x1xf32, #tpu.memory_space<vmem>>, vector<1x8x1xf32>
    %115 = vector.shape_cast %114 : vector<1x8x1xf32> to vector<8x1xf32>
    %cst_59 = arith.constant dense<0.000000e+00> : vector<8xf32>
    %116 = vector.multi_reduction <add>, %112, %cst_59 [1] : vector<8x512xf32> to vector<8xf32>
    %117 = vector.shape_cast %116 : vector<8xf32> to vector<8x1xf32>
    %118 = arith.addf %115, %117 : vector<8x1xf32>
    %c0_60 = arith.constant 0 : index
    %c0_61 = arith.constant 0 : index
    %c0_62 = arith.constant 0 : index
    %119 = vector.load %arg8[%c0_60, %c0_61, %c0_62] : memref<1x8x1xf32, #tpu.memory_space<vmem>>, vector<1x8x1xf32>
    %120 = vector.shape_cast %119 : vector<1x8x1xf32> to vector<8x1xf32>
    %121 = vector.shape_cast %118 : vector<8x1xf32> to vector<1x8x1xf32>
    tpu.vector_store %arg8[%c0_60, %c0_61, %c0_62], %121 {strides = array<i32>} : memref<1x8x1xf32, #tpu.memory_space<vmem>>, vector<1x8x1xf32>,
    %c0_63 = arith.constant 0 : index
    %c0_64 = arith.constant 0 : index
    %c0_65 = arith.constant 0 : index
    %122 = vector.load %arg9[%c0_63, %c0_64, %c0_65] : memref<1x8x1xf32, #tpu.memory_space<vmem>>, vector<1x8x1xf32>
    %123 = vector.shape_cast %122 : vector<1x8x1xf32> to vector<8x1xf32>
    %124 = arith.mulf %112, %112 : vector<8x512xf32>
    %cst_66 = arith.constant dense<0.000000e+00> : vector<8xf32>
    %125 = vector.multi_reduction <add>, %124, %cst_66 [1] : vector<8x512xf32> to vector<8xf32>
    %126 = vector.shape_cast %125 : vector<8xf32> to vector<8x1xf32>
    %127 = arith.addf %123, %126 : vector<8x1xf32>
    %c0_67 = arith.constant 0 : index
    %c0_68 = arith.constant 0 : index
    %c0_69 = arith.constant 0 : index
    %128 = vector.load %arg9[%c0_67, %c0_68, %c0_69] : memref<1x8x1xf32, #tpu.memory_space<vmem>>, vector<1x8x1xf32>
    %129 = vector.shape_cast %128 : vector<1x8x1xf32> to vector<8x1xf32>
    %130 = vector.shape_cast %127 : vector<8x1xf32> to vector<1x8x1xf32>
    tpu.vector_store %arg9[%c0_67, %c0_68, %c0_69], %130 {strides = array<i32>} : memref<1x8x1xf32, #tpu.memory_space<vmem>>, vector<1x8x1xf32>,
    return
  }
  func.func @transform_0(%arg0: i32, %arg1: i32) -> (i32, i32) {
    %c1_i32 = arith.constant 1 : i32
    %0 = arith.muli %arg0, %c1_i32 : i32
    %1 = arith.addi %0, %arg1 : i32
    %c0_i32 = arith.constant 0 : i32
    %c0_i32_0 = arith.constant 0 : i32
    return %c0_i32, %1 : i32, i32
  }
  func.func @transform_1(%arg0: i32, %arg1: i32) -> (i32, i32, i32) {
    %c0_i32 = arith.constant 0 : i32
    %c0_i32_0 = arith.constant 0 : i32
    %c0_i32_1 = arith.constant 0 : i32
    %c0_i32_2 = arith.constant 0 : i32
    return %c0_i32, %c0_i32_0, %c0_i32_1 : i32, i32, i32
  }
  func.func @transform_2(%arg0: i32, %arg1: i32) -> (i32, i32) {
    %c0_i32 = arith.constant 0 : i32
    %c0_i32_0 = arith.constant 0 : i32
    %c0_i32_1 = arith.constant 0 : i32
    return %c0_i32, %c0_i32_0 : i32, i32
  }
  func.func @transform_3(%arg0: i32, %arg1: i32) -> (i32, i32) {
    %c0_i32 = arith.constant 0 : i32
    %c0_i32_0 = arith.constant 0 : i32
    %c0_i32_1 = arith.constant 0 : i32
    return %c0_i32, %c0_i32_0 : i32, i32
  }
  func.func @transform_4(%arg0: i32, %arg1: i32) -> (i32, i32) {
    %c0_i32 = arith.constant 0 : i32
    %c0_i32_0 = arith.constant 0 : i32
    %c0_i32_1 = arith.constant 0 : i32
    return %c0_i32, %c0_i32_0 : i32, i32
  }
  func.func @transform_5(%arg0: i32, %arg1: i32) -> (i32, i32) {
    %c1_i32 = arith.constant 1 : i32
    %0 = arith.muli %arg0, %c1_i32 : i32
    %1 = arith.addi %0, %arg1 : i32
    %c0_i32 = arith.constant 0 : i32
    %c0_i32_0 = arith.constant 0 : i32
    return %c0_i32, %1 : i32, i32
  }
  func.func @transform_6(%arg0: i32, %arg1: i32) -> (i32, i32, i32) {
    %c0_i32 = arith.constant 0 : i32
    %c0_i32_0 = arith.constant 0 : i32
    %c0_i32_1 = arith.constant 0 : i32
    return %arg0, %c0_i32, %c0_i32_0 : i32, i32, i32
  }
  func.func @transform_7(%arg0: i32, %arg1: i32) -> (i32, i32, i32) {
    %c0_i32 = arith.constant 0 : i32
    %c0_i32_0 = arith.constant 0 : i32
    %c0_i32_1 = arith.constant 0 : i32
    return %arg0, %c0_i32, %c0_i32_0 : i32, i32, i32
  }
}

</mosaic_0001>

<bundles_post_ra>
// kernel: block_encoder_forward.5
= control target key start
LH: loop header
LB: loop body
LE: loop exit
PB: predicated region body
PF: predicated region fallthrough
CT: control target
= control target key end

     0   :  { %v52_v0 = vmov 0   ;;  %s103_s0 = inlined_call_operand.vmem [shape: f32[8,1], index: 0, kind: input, shape index: {}]   ;;  %s104_s1 = inlined_call_operand.vmem [shape: f32[8,1], index: 1, kind: input, shape index: {}]   ;;  %s105_s2 = inlined_call_operand.vmem [shape: f32[8,512], index: 2, kind: input, shape index: {}]   ;;  %s106_s3 = inlined_call_operand.vmem [shape: f32[8,512], index: 3, kind: output, shape index: {}]  }
   0x1   :  { %51 = vset.pattern.permute.xlu0 %v52_v0  ;;  %v18_v1 = vld [vmem:[%s103_s0] sm:$0xff]  ;;  %v15_v5 = vld [vmem:[%s105_s2 + $0x8] sm:$0xff]  ;;  %v16_v6 = vld [vmem:[%s105_s2 + $0x10] sm:$0xff] }
   0x2   :  { %21 = vperm.xlu0 %51, %v18_v1   ;;  %v28_v2 = vld [vmem:[%s104_s1] sm:$0xff]  ;;  %v17_v7 = vld [vmem:[%s105_s2 + $0x18] sm:$0xff] }
   0x3   :  { %v14_v3 = vld [vmem:[%s105_s2] sm:$0xff] }
   0x6   :  { %31 = vperm.xlu0 %51, %v28_v2  }
  0x81   :  { %v22_v4 = vpop.permute.xlu0 %21 }
  0x82   :  { %v24_v8 = vmul.f32 %v22_v4, %v14_v3  ;;  %v25_v9 = vmul.f32 %v22_v4, %v15_v5  ;;  %v26_v10 = vmul.f32 %v22_v4, %v16_v6  ;;  %v27_v11 = vmul.f32 %v22_v4, %v17_v7 }
  0x85   :  { %v32_v12 = vpop.permute.xlu0 %31 }
  0x86   :  { %v34_v13 = vadd.f32 %v32_v12, %v24_v8  ;;  %v35_v14 = vadd.f32 %v32_v12, %v25_v9  ;;  %v36_v15 = vadd.f32 %v32_v12, %v26_v10  ;;  %v37_v16 = vadd.f32 %v32_v12, %v27_v11 }
  0x88   :  { %v38_v17 = vmax.f32 %v34_v13, 0.0  ;;  %v39_v18 = vmax.f32 %v35_v14, 0.0  ;;  %v40_v19 = vmax.f32 %v36_v15, 0.0  ;;  %v41_v20 = vmax.f32 %v37_v16, 0.0 }
  0x8a   :  { %42 = vst [vmem:[%s106_s3] sm:$0xff] %v38_v17  ;;  %43 = vst [vmem:[%s106_s3 + $0x8] sm:$0xff] %v39_v18 }
  0x8b   :  { %44 = vst [vmem:[%s106_s3 + $0x10] sm:$0xff] %v40_v19  ;;  %45 = vst [vmem:[%s106_s3 + $0x18] sm:$0xff] %v41_v20 }

// kernel: block_encoder_forward.4
= control target key start
LH: loop header
LB: loop body
LE: loop exit
PB: predicated region body
PF: predicated region fallthrough
CT: control target
= control target key end

     0   :  { %v1886_v0 = vmov 0   ;;  %v1887_v9 = vmov 0.0   ;;  %s1888_s11 = smov 16   ;;  %s1889_s12 = smov 17   ;;  %v94_v23 = vlaneseq  ;;  %vm252_vm2 = vcmask 64512   ;;  %s2307_s3 = inlined_call_operand.vmem [shape: f32[8,1], index: 3, kind: input, shape index: {}]   ;;  %s2308_s4 = inlined_call_operand.vmem [shape: f32[8,1], index: 4, kind: input, shape index: {}]   ;;  %s2309_s0 = inlined_call_operand.vmem [shape: f32[8,512], index: 0, kind: input, shape index: {}]   ;;  %s2310_s2 = inlined_call_operand.vmem [shape: f32[8,1], index: 2, kind: input, shape index: {}]   ;;  %s2311_s1 = inlined_call_operand.vmem [shape: f32[9,8,8], index: 1, kind: input, shape index: {}]   ;;  %s2312_s6 = inlined_call_operand.vmem [shape: f32[1,8,1], index: 6, kind: output, shape index: {1}]   ;;  %s2313_s5 = inlined_call_operand.vmem [shape: f32[8,512], index: 5, kind: output, shape index: {0}]   ;;  %s2314_s7 = inlined_call_operand.vmem [shape: f32[1,8,1], index: 7, kind: output, shape index: {2}]  }
   0x1   :  { %1885 = vset.pattern.permute.xlu0 %v1886_v0  ;;  %v70_v1 = vld [vmem:[%s2307_s3] sm:$0xff]  ;;  %v69_v5 = vld [vmem:[%s2309_s0 + $0x18] sm:$0xff]  ;;  %v67_v6 = vld [vmem:[%s2309_s0 + $0x8] sm:$0xff]  ;;  %320 = vmatprep.mubr.f32.mxu0 %v1887_v9  ;;  %s1891_s13 = smov 1   ;;  %s1892_s14 = smov 127  }
   0x2   :  { %73 = vperm.xlu0 %1885, %v70_v1   ;;  %v80_v2 = vld [vmem:[%s2308_s4] sm:$0xff]  ;;  %391 = vmatprep.mubr.f32.mxu1 %v1887_v9  ;;  %v68_v14 = vld [vmem:[%s2309_s0 + $0x10] sm:$0xff]  ;;  %s1893_s15 = smov 113   ;;  %s1894_s16 = smov 112   ;;  %v1999_v24 = vand.u32 127, %v94_v23  ;;  %v1789_v36 = vld [vmem:[%s2311_s1 + $0x8] sm:$0xff] }
   0x3   :  { %v66_v4 = vld [vmem:[%s2309_s0] sm:$0xff]  ;;  %s1890_s0 = smov 15   ;;  %s1895_s17 = smov 111  }
   0x4   :  { %v1714_v22 = vld [vmem:[%s2310_s2] sm:$0xff]  ;;  %v103_v27 = vand.u32 255, %v1999_v24  ;;  %v97_v28 = vadd.s32 256, %v1999_v24  ;;  %vm241_vm0 = vcmp.lt.s32.totalorder %v1999_v24, 16  ;;  %v2005_v29 = vadd.s32 128, %v1999_v24 }
   0x5   :  { %v151_v35 = vand.u32 15, %v1999_v24  ;;  %v2023_v39 = vadd.s32 384, %v1999_v24  ;;  %vm219_vm5 = vcmp.lt.s32.totalorder %v1999_v24, 17  ;;  %v232_v53 = vld [vmem:[%s2311_s1] sm:$0xff]  ;;  %vm551_vm12 = vcmp.lt.s32.totalorder %v1999_v24, 15 }
   0x6   :  { %83 = vperm.xlu0 %1885, %v80_v2   ;;  %vm2007_vm1 = vcmp.ge.s32.totalorder %v103_v27, 16  ;;  %v117_v33 = vand.u32 255, %v97_v28  ;;  %v158_v38 = vand.u32 15, %v2005_v29  ;;  %v165_v45 = vand.u32 15, %v97_v28  ;;  %v1800_v2 = vld [vmem:[%s2311_s1 + $0x10] sm:$0xff] }
   0x7   :  { %vm2030_vm4 = vcmp.ge.s32.totalorder %v151_v35, 1  ;;  %v172_v48 = vand.u32 15, %v2023_v39  ;;  %vm2075_vm11 = vcmp.lt.s32.totalorder %v151_v35, 15 }
   0x8   :  { %vm2026_vm3 = vcmp.ge.s32.totalorder %v117_v33, 16  ;;  %vm2042_vm6 = vcmp.ge.s32.totalorder %v158_v38, 1  ;;  %vm224_vm7 = vmand %vm2007_vm1, %vm2030_vm4  ;;  %vm2052_vm8 = vcmp.ge.s32.totalorder %v165_v45, 1  ;;  %vm2087_vm13 = vcmp.lt.s32.totalorder %v158_v38, 15 }
   0x9   :  { %vm2066_vm9 = vcmp.ge.s32.totalorder %v172_v48, 1  ;;  %vm226_vm10 = vmand %vm2026_vm3, %vm2052_vm8  ;;  %vm2096_vm15 = vcmp.lt.s32.totalorder %v165_v45, 15 }
   0xa   :  { %vm556_vm14 = vmand %vm2007_vm1, %vm2075_vm11 }
  0x81   :  { %v74_v3 = vpop.permute.xlu0 %73 }
  0x82   :  { %v76_v7 = vmul.f32 %v74_v3, %v66_v4  ;;  %v79_v8 = vmul.f32 %v74_v3, %v69_v5  ;;  %v77_v11 = vmul.f32 %v74_v3, %v67_v6  ;;  %v78_v18 = vmul.f32 %v74_v3, %v68_v14 }
  0x85   :  { %v84_v10 = vpop.permute.xlu0 %83 }
  0x86   :  { %v86_v12 = vadd.f32 %v84_v10, %v76_v7  ;;  %v89_v13 = vadd.f32 %v84_v10, %v79_v8  ;;  %v87_v15 = vadd.f32 %v84_v10, %v77_v11  ;;  %v88_v19 = vadd.f32 %v84_v10, %v78_v18 }
  0x88   :  { %v1956_v16 = vmax.f32 %v86_v12, 0.0  ;;  %v1958_v17 = vmax.f32 %v89_v13, 0.0  ;;  %v1962_v20 = vmax.f32 %v87_v15, 0.0  ;;  %v1966_v21 = vmax.f32 %v88_v19, 0.0  ;;  %v1807_v13 = vld [vmem:[%s2311_s1 + $0x18] sm:$0xff] }
  0x8a   :  { %239 = vrot.lane.b32.xlu0 %v1958_v17, %s1888_s11  ;;  %233 = vrot.lane.b32.xlu1 %v1956_v16, %s1888_s11 }
  0x8e   :  { %211 = vrot.lane.b32.xlu0 %v1956_v16, %s1889_s12  ;;  %235 = vrot.lane.b32.xlu1 %v1962_v20, %s1888_s11 }
  0x92   :  { %217 = vrot.lane.b32.xlu0 %v1958_v17, %s1889_s12  ;;  %237 = vrot.lane.b32.xlu1 %v1966_v21, %s1888_s11 }
  0x96   :  { %543 = vrot.lane.b32.xlu0 %v1956_v16, %s1890_s0  ;;  %213 = vrot.lane.b32.xlu1 %v1962_v20, %s1889_s12 }
  0x9a   :  { %549 = vrot.lane.b32.xlu0 %v1958_v17, %s1890_s0  ;;  %215 = vrot.lane.b32.xlu1 %v1966_v21, %s1889_s12 }
  0x9e   :  { %715 = vrot.lane.b32.xlu0 %v1956_v16, %s1891_s13  ;;  %545 = vrot.lane.b32.xlu1 %v1962_v20, %s1890_s0 }
  0xa2   :  { %721 = vrot.lane.b32.xlu0 %v1958_v17, %s1891_s13  ;;  %547 = vrot.lane.b32.xlu1 %v1966_v21, %s1890_s0 }
  0xa6   :  { %1036 = vrot.lane.b32.xlu0 %v1962_v20, %s1892_s14  ;;  %717 = vrot.lane.b32.xlu1 %v1962_v20, %s1891_s13 }
  0xaa   :  { %1034 = vrot.lane.b32.xlu0 %v1956_v16, %s1892_s14  ;;  %719 = vrot.lane.b32.xlu1 %v1966_v21, %s1891_s13 }
  0xae   :  { %1204 = vrot.lane.b32.xlu0 %v1962_v20, %s1893_s15  ;;  %1038 = vrot.lane.b32.xlu1 %v1966_v21, %s1892_s14 }
  0xb2   :  { %1202 = vrot.lane.b32.xlu0 %v1956_v16, %s1893_s15  ;;  %1040 = vrot.lane.b32.xlu1 %v1958_v17, %s1892_s14 }
  0xb6   :  { %1376 = vrot.lane.b32.xlu0 %v1962_v20, %s1894_s16  ;;  %1206 = vrot.lane.b32.xlu1 %v1966_v21, %s1893_s15 }
  0xba   :  { %1374 = vrot.lane.b32.xlu0 %v1956_v16, %s1894_s16  ;;  %1208 = vrot.lane.b32.xlu1 %v1958_v17, %s1893_s15 }
  0xbe   :  { %1544 = vrot.lane.b32.xlu0 %v1962_v20, %s1895_s17  ;;  %1378 = vrot.lane.b32.xlu1 %v1966_v21, %s1894_s16 }
  0xc2   :  { %1542 = vrot.lane.b32.xlu0 %v1956_v16, %s1895_s17  ;;  %1380 = vrot.lane.b32.xlu1 %v1958_v17, %s1894_s16 }
  0xc6   :  { %1717 = vperm.xlu0 %1885, %v1714_v22   ;;  %1546 = vrot.lane.b32.xlu1 %v1966_v21, %s1895_s17 }
  0xca   :  { %1548 = vrot.lane.b32.xlu1 %v1958_v17, %s1895_s17 }
  0xfc   :  { %v240_v25 = vpop.permute.xlu0 %239  ;;  %v234_v26 = vpop.permute.xlu1 %233 }
  0xfd   :  { %v245_v37 = vsel %vm241_vm0, %v240_v25, %v234_v26 }
 0x100   :  { %v212_v30 = vpop.permute.xlu0 %211  ;;  %v236_v31 = vpop.permute.xlu1 %235 }
 0x101   :  { %v244_v34 = vsel %vm241_vm0, %v234_v26, %v236_v31  ;;  %v1814_v26 = vld [vmem:[%s2311_s1 + $0x20] sm:$0xff] }
 0x102   :  { %256 = vmatprep.subr.mxu0 %v244_v34 }
 0x103   :  { %1790 = vmatpush1.msk.msra.mxu0 %vm2007_vm1, %v245_v37  ;;  %vm558_vm1 = vmand %vm2026_vm3, %vm2096_vm15 }
 0x104   :  { %v218_v40 = vpop.permute.xlu0 %217  ;;  %1791 = vmatmul.mubr.msk.f32.vlgmr.msra.gmra.mrb[0].mxu0 %vm252_vm2, %v1789_v36  ;;  %v238_v41 = vpop.permute.xlu1 %237 }
 0x105   :  { %v242_v44 = vsel %vm241_vm0, %v238_v41, %v240_v25  ;;  %v243_v46 = vsel %vm241_vm0, %v236_v31, %v238_v41  ;;  %465 = vmatprep.mubr.f32.mxu0 %v1887_v9  ;;  %v223_v54 = vsel %vm219_vm5, %v218_v40, %v212_v30  ;;  %vm2110_vm0 = vcmp.lt.s32.totalorder %v172_v48, 15 }
 0x106   :  { %327 = vmatprep.subr.mxu1 %v242_v44  ;;  %v110_v25 = vand.u32 255, %v2005_v29  ;;  %v1824_v44 = vld [vmem:[%s2311_s1 + $0x30] sm:$0xff] }
 0x107   :  { %1792 = vmatpush1.msk.msra.mxu1 %vm2026_vm3, %v243_v46  ;;  %vm1042_vm3 = vcmp.lt.s32.totalorder %v1999_v24, 127 }
 0x108   :  { %v544_v49 = vpop.permute.xlu0 %543  ;;  %1793 = vmatmul.mubr.msk.f32.vlgmr.msra.gmra.mrb[0].mxu1 %vm252_vm2, %v1789_v36  ;;  %v214_v50 = vpop.permute.xlu1 %213  ;;  %v1817_v36 = vld [vmem:[%s2311_s1 + $0x28] sm:$0xff] }
 0x109   :  { %v222_v52 = vsel %vm219_vm5, %v212_v30, %v214_v50  ;;  %536 = vmatprep.mubr.f32.mxu1 %v1887_v9 }
 0x10a   :  { %1794 = vmatprep.subr.msk.mxu0 %vm2042_vm6, %v222_v52 }
 0x10b   :  { %1795 = vmatpush1.msk.msra.mxu0 %vm224_vm7, %v223_v54  ;;  %vm2168_vm7 = vcmp.lt.s32.totalorder %v110_v25, 240 }
 0x10c   :  { %v550_v56 = vpop.permute.xlu0 %549  ;;  %1796 = vmatmul.mubr.msk.f32.vlgmr.msra.gmra.mrb[0].mxu0 %vm252_vm2, %v232_v53  ;;  %v216_v57 = vpop.permute.xlu1 %215 }
 0x10d   :  { %v220_v59 = vsel %vm219_vm5, %v216_v57, %v218_v40  ;;  %v221_v60 = vsel %vm219_vm5, %v214_v50, %v216_v57  ;;  %633 = vmatprep.mubr.f32.mxu0 %v1887_v9  ;;  %v555_v3 = vsel %vm551_vm12, %v550_v56, %v544_v49  ;;  %vm723_vm5 = vcmp.lt.s32.totalorder %v1999_v24, 1 }
 0x10e   :  { %1797 = vmatprep.subr.msk.mxu1 %vm2066_vm9, %v220_v59  ;;  %v1836_v59 = vld [vmem:[%s2311_s1 + $0x40] sm:$0xff] }
 0x10f   :  { %1798 = vmatpush1.msk.msra.mxu1 %vm226_vm10, %v221_v60  ;;  %vm1216_vm10 = vmand %vm2168_vm7, %vm2042_vm6 }
 0x110   :  { %v716_v62 = vpop.permute.xlu0 %715  ;;  %1799 = vmatmul.mubr.msk.f32.vlgmr.msra.gmra.mrb[0].mxu1 %vm252_vm2, %v232_v53  ;;  %v546_v63 = vpop.permute.xlu1 %545  ;;  %v1831_v53 = vld [vmem:[%s2311_s1 + $0x38] sm:$0xff] }
 0x111   :  { %v554_v1 = vsel %vm551_vm12, %v544_v49, %v546_v63  ;;  %704 = vmatprep.mubr.f32.mxu1 %v1887_v9 }
 0x112   :  { %1801 = vmatprep.subr.msk.mxu0 %vm2087_vm13, %v554_v1 }
 0x113   :  { %1802 = vmatpush1.msk.msra.mxu0 %vm556_vm14, %v555_v3 }
 0x114   :  { %v722_v5 = vpop.permute.xlu0 %721  ;;  %1803 = vmatmul.mubr.msk.f32.vlgmr.msra.gmra.mrb[0].mxu0 %vm252_vm2, %v1800_v2  ;;  %v548_v6 = vpop.permute.xlu1 %547 }
 0x115   :  { %v552_v7 = vsel %vm551_vm12, %v548_v6, %v550_v56  ;;  %v553_v8 = vsel %vm551_vm12, %v546_v63, %v548_v6  ;;  %801 = vmatprep.mubr.f32.mxu0 %v1887_v9  ;;  %v727_v14 = vsel %vm723_vm5, %v722_v5, %v716_v62  ;;  %vm1210_vm12 = vcmp.lt.s32.totalorder %v1999_v24, 113 }
 0x116   :  { %1804 = vmatprep.subr.msk.mxu1 %vm2110_vm0, %v552_v7 }
 0x117   :  { %1805 = vmatpush1.msk.msra.mxu1 %vm558_vm1, %v553_v8  ;;  %vm1382_vm1 = vcmp.lt.s32.totalorder %v1999_v24, 112 }
 0x118   :  { %v1037_v10 = vpop.permute.xlu0 %1036  ;;  %1806 = vmatmul.mubr.msk.f32.vlgmr.msra.gmra.mrb[0].mxu1 %vm252_vm2, %v1800_v2  ;;  %v718_v11 = vpop.permute.xlu1 %717 }
 0x119   :  { %v726_v12 = vsel %vm723_vm5, %v716_v62, %v718_v11  ;;  %872 = vmatprep.mubr.f32.mxu1 %v1887_v9 }
 0x11a   :  { %1808 = vmatprep.subr.msk.mxu0 %vm2042_vm6, %v726_v12 }
 0x11b   :  { %1809 = vmatpush1.msk.msra.mxu0 %vm2030_vm4, %v727_v14 }
 0x11c   :  { %v1035_v15 = vpop.permute.xlu0 %1034  ;;  %1810 = vmatmul.mubr.msk.f32.vlgmr.msra.gmra.mrb[0].mxu0 %vm252_vm2, %v1807_v13  ;;  %888 = vmatprep.subr.mxu0 %v1962_v20  ;;  %v720_v18 = vpop.permute.xlu1 %719 }
 0x11d   :  { %v724_v19 = vsel %vm723_vm5, %v720_v18, %v722_v5  ;;  %v725_v22 = vsel %vm723_vm5, %v718_v11, %v720_v18  ;;  %889 = vmatpush1.msra.mxu0 %v1956_v16  ;;  %952 = vmatprep.mubr.f32.mxu0 %v1887_v9 }
 0x11e   :  { %1811 = vmatprep.subr.msk.mxu1 %vm2066_vm9, %v724_v19 }
 0x11f   :  { %1812 = vmatpush1.msk.msra.mxu1 %vm2052_vm8, %v725_v22 }
 0x120   :  { %v1205_v20 = vpop.permute.xlu0 %1204  ;;  %1813 = vmatmul.mubr.msk.f32.vlgmr.msra.gmra.mrb[0].mxu1 %vm252_vm2, %v1807_v13  ;;  %959 = vmatprep.subr.mxu1 %v1958_v17  ;;  %v1039_v23 = vpop.permute.xlu1 %1038  ;;  %v1045_v17 = vsel %vm1042_vm3, %v1035_v15, %v1037_v10 }
 0x121   :  { %v1044_v16 = vsel %vm1042_vm3, %v1037_v10, %v1039_v23  ;;  %960 = vmatpush1.msra.mxu1 %v1966_v21  ;;  %1023 = vmatprep.mubr.f32.mxu1 %v1887_v9  ;;  %v124_v21 = vand.u32 255, %v2023_v39 }
 0x122   :  { %1818 = vmatprep.subr.msk.mxu0 %vm2087_vm13, %v1044_v16 }
 0x123   :  { %vm2188_vm14 = vcmp.lt.s32.totalorder %v124_v21, 240 }
 0x124   :  { %v1203_v27 = vpop.permute.xlu0 %1202  ;;  %1815 = vmatmul.mubr.msk.f32.vlgmr.msra.gmra.mrb[0].mxu0 %vm252_vm2, %v1814_v26  ;;  %v1041_v28 = vpop.permute.xlu1 %1040  ;;  %vm1218_vm6 = vmand %vm2188_vm14, %vm2066_vm9 }
 0x125   :  { %1819 = vmatpush1.msk.msra.mxu0 %vm2075_vm11, %v1045_v17  ;;  %v1046_v30 = vsel %vm1042_vm3, %v1041_v28, %v1035_v15  ;;  %1120 = vmatprep.mubr.f32.mxu0 %v1887_v9  ;;  %v1043_v31 = vsel %vm1042_vm3, %v1039_v23, %v1041_v28  ;;  %v1213_v37 = vsel %vm1210_vm12, %v1203_v27, %v1205_v20  ;;  %vm1558_vm9 = vmand %vm2188_vm14, %vm2110_vm0 }
 0x126   :  { %1821 = vmatprep.subr.msk.mxu1 %vm2110_vm0, %v1046_v30 }
 0x128   :  { %v1377_v32 = vpop.permute.xlu0 %1376  ;;  %1816 = vmatmul.mubr.msk.f32.vlgmr.msra.gmra.mrb[0].mxu1 %vm252_vm2, %v1814_v26  ;;  %v1207_v33 = vpop.permute.xlu1 %1206 }
 0x129   :  { %1822 = vmatpush1.msk.msra.mxu1 %vm2096_vm15, %v1043_v31  ;;  %v1212_v35 = vsel %vm1210_vm12, %v1205_v20, %v1207_v33  ;;  %1191 = vmatprep.mubr.f32.mxu1 %v1887_v9 }
 0x12a   :  { %1825 = vmatprep.subr.msk.mxu0 %vm1216_vm10, %v1212_v35 }
 0x12c   :  { %1820 = vmatmul.mubr.msk.f32.vlgmr.msra.gmra.mrb[0].mxu0 %vm252_vm2, %v1817_v36  ;;  %v1209_v38 = vpop.permute.xlu1 %1208  ;;  %v1375_v39 = vpop.permute.xlu0 %1374 }
 0x12d   :  { %1826 = vmatpush1.msk.msra.mxu0 %vm2030_vm4, %v1213_v37  ;;  %v1214_v40 = vsel %vm1210_vm12, %v1209_v38, %v1203_v27  ;;  %1292 = vmatprep.mubr.f32.mxu0 %v1887_v9  ;;  %v1211_v41 = vsel %vm1210_vm12, %v1207_v33, %v1209_v38  ;;  %v1385_v46 = vsel %vm1382_vm1, %v1375_v39, %v1377_v32  ;;  %vm1556_vm4 = vmand %vm2168_vm7, %vm2087_vm13 }
 0x12e   :  { %1828 = vmatprep.subr.msk.mxu1 %vm1218_vm6, %v1214_v40 }
 0x130   :  { %1823 = vmatmul.mubr.msk.f32.vlgmr.msra.gmra.mrb[0].mxu1 %vm252_vm2, %v1817_v36  ;;  %v1379_v42 = vpop.permute.xlu1 %1378  ;;  %v1545_v45 = vpop.permute.xlu0 %1544 }
 0x131   :  { %1829 = vmatpush1.msk.msra.mxu1 %vm2052_vm8, %v1211_v41  ;;  %v1384_v43 = vsel %vm1382_vm1, %v1377_v32, %v1379_v42  ;;  %1363 = vmatprep.mubr.f32.mxu1 %v1887_v9  ;;  %vm1550_vm8 = vcmp.lt.s32.totalorder %v1999_v24, 111 }
 0x132   :  { %1832 = vmatprep.subr.msk.mxu0 %vm2168_vm7, %v1384_v43 }
 0x134   :  { %1827 = vmatmul.mubr.msk.f32.vlgmr.msra.gmra.mrb[0].mxu0 %vm252_vm2, %v1824_v44  ;;  %v1381_v47 = vpop.permute.xlu1 %1380  ;;  %v1543_v51 = vpop.permute.xlu0 %1542 }
 0x135   :  { %1397 = vmatpush1.msra.mxu0 %v1385_v46  ;;  %v1386_v48 = vsel %vm1382_vm1, %v1381_v47, %v1375_v39  ;;  %1460 = vmatprep.mubr.f32.mxu0 %v1887_v9  ;;  %v1383_v49 = vsel %vm1382_vm1, %v1379_v42, %v1381_v47  ;;  %v1553_v54 = vsel %vm1550_vm8, %v1543_v51, %v1545_v45 }
 0x136   :  { %1834 = vmatprep.subr.msk.mxu1 %vm2188_vm14, %v1386_v48 }
 0x138   :  { %1830 = vmatmul.mubr.msk.f32.vlgmr.msra.gmra.mrb[0].mxu1 %vm252_vm2, %v1824_v44  ;;  %v1547_v50 = vpop.permute.xlu1 %1546 }
 0x139   :  { %1468 = vmatpush1.msra.mxu1 %v1383_v49  ;;  %v1552_v52 = vsel %vm1550_vm8, %v1545_v45, %v1547_v50  ;;  %1531 = vmatprep.mubr.f32.mxu1 %v1887_v9 }
 0x13a   :  { %1837 = vmatprep.subr.msk.mxu0 %vm1556_vm4, %v1552_v52 }
 0x13c   :  { %1833 = vmatmul.mubr.msk.f32.vlgmr.msra.gmra.mrb[0].mxu0 %vm252_vm2, %v1831_v53  ;;  %v1549_v55 = vpop.permute.xlu1 %1548 }
 0x13d   :  { %1838 = vmatpush1.msk.msra.mxu0 %vm2075_vm11, %v1553_v54  ;;  %v1554_v56 = vsel %vm1550_vm8, %v1549_v55, %v1543_v51  ;;  %1632 = vmatprep.mubr.f32.mxu0 %v1887_v9  ;;  %v1551_v57 = vsel %vm1550_vm8, %v1547_v50, %v1549_v55  ;;  %vm63_vm11 = vcmask 7168  }
 0x13e   :  { %1840 = vmatprep.subr.msk.mxu1 %vm1558_vm9, %v1554_v56  ;;  %64 = vst.msk [vmem:[%s2312_s6] sm:$0xff] %vm63_vm11, %v1887_v9  ;;  %65 = vst.msk [vmem:[%s2314_s7] sm:$0xff] %vm63_vm11, %v1887_v9 }
 0x140   :  { %1835 = vmatmul.mubr.msk.f32.vlgmr.msra.gmra.mrb[0].mxu1 %vm252_vm2, %v1831_v53 }
 0x141   :  { %1841 = vmatpush1.msk.msra.mxu1 %vm2096_vm15, %v1551_v57  ;;  %1703 = vmatprep.mubr.f32.mxu1 %v1887_v9 }
 0x144   :  { %1839 = vmatmul.mubr.msk.f32.vlgmr.msra.gmra.mrb[0].mxu0 %vm252_vm2, %v1836_v59 }
 0x145   :  { %v1718_v24 = vpop.permute.xlu0 %1717  ;;  %v1728_v14 = vld [vmem:[%s2312_s6] sm:$0xff] }
 0x146   :  { %v1737_v18 = vld [vmem:[%s2314_s7] sm:$0xff] }
 0x148   :  { %1842 = vmatmul.mubr.msk.f32.vlgmr.msra.gmra.mrb[0].mxu1 %vm252_vm2, %v1836_v59 }
 0x217   :  { %v1634_v58 = vpop.f32.mrb[0].mxu0 }
 0x218   :  { %v1720_v60 = vadd.f32 %v1718_v24, %v1634_v58  ;;  %v1636_v61 = vpop.f32.mrb[1].mxu0 }
 0x219   :  { %v1721_v62 = vadd.f32 %v1718_v24, %v1636_v61 }
 0x21a   :  { %1724 = vst [vmem:[%s2313_s5] sm:$0xff] %v1720_v60  ;;  %v1738_v63 = vmul.f32 %v1720_v60, %v1720_v60 }
 0x21b   :  { %1725 = vst [vmem:[%s2313_s5 + $0x8] sm:$0xff] %v1721_v62  ;;  %v1729_v0 = vadd.f32 %v1721_v62, %v1720_v60  ;;  %v1739_v1 = vmul.f32 %v1721_v62, %v1721_v62  ;;  %v1705_v2 = vpop.f32.mrb[0].mxu1 }
 0x21c   :  { %v1722_v3 = vadd.f32 %v1718_v24, %v1705_v2  ;;  %v1707_v4 = vpop.f32.mrb[1].mxu1 }
 0x21d   :  { %v1723_v5 = vadd.f32 %v1718_v24, %v1707_v4  ;;  %v1742_v6 = vadd.f32 %v1739_v1, %v1738_v63 }
 0x21e   :  { %1726 = vst [vmem:[%s2313_s5 + $0x10] sm:$0xff] %v1722_v3  ;;  %v1740_v7 = vmul.f32 %v1722_v3, %v1722_v3  ;;  %v1730_v8 = vadd.f32 %v1729_v0, %v1722_v3 }
 0x21f   :  { %1727 = vst [vmem:[%s2313_s5 + $0x18] sm:$0xff] %v1723_v5  ;;  %v1741_v10 = vmul.f32 %v1723_v5, %v1723_v5 }
 0x220   :  { %v1731_v11 = vadd.f32 %v1730_v8, %v1723_v5  ;;  %v1743_v12 = vadd.f32 %v1742_v6, %v1740_v7 }
 0x222   :  { %1732 = vadd.xlane.f32.xlu1 %v1731_v11  ;;  %v1744_v13 = vadd.f32 %v1743_v12, %v1741_v10 }
 0x224   :  { %1745 = vadd.xlane.f32.xlu0 %v1744_v13 }
 0x2af   :  { %v1733_v15 = vpop.xlane.xlu1 %1732 }
 0x2b0   :  { %v1734_v19 = vadd.f32 %v1733_v15, %v1728_v14 }
 0x2b1   :  { %v1746_v22 = vpop.xlane.xlu0 %1745 }
 0x2b2   :  { %1736 = vst.msk [vmem:[%s2312_s6] sm:$0xff] %vm63_vm11, %v1734_v19  ;;  %v1747_v20 = vadd.f32 %v1746_v22, %v1737_v18 }
 0x2b4   :  { %1748 = vst.msk [vmem:[%s2314_s7] sm:$0xff] %vm63_vm11, %v1747_v20 }

// kernel: block_encoder_forward.3
= control target key start
LH: loop header
LB: loop body
LE: loop exit
PB: predicated region body
PF: predicated region fallthrough
CT: control target
= control target key end

     0   :  { %v1981_v2 = vmov 0.0   ;;  %s1982_s26 = smov 16   ;;  %s1984_s27 = smov 15   ;;  %v1990_v5 = vmov 0   ;;  %v68_v7 = vlaneseq  ;;  %vm236_vm1 = vcmask 1043456   ;;  %s2434_s0 = inlined_call_operand.vmem [shape: f32[4,512], index: 0, kind: input, shape index: {}]   ;;  %s2435_s3 = inlined_call_operand.vmem [shape: f32[4,1], index: 3, kind: input, shape index: {}]   ;;  %s2436_s4 = inlined_call_operand.vmem [shape: f32[4,1], index: 4, kind: input, shape index: {}]   ;;  %s2437_s2 = inlined_call_operand.vmem [shape: f32[8,1], index: 2, kind: input, shape index: {}]   ;;  %s2438_s1 = inlined_call_operand.vmem [shape: f32[9,8,4], index: 1, kind: input, shape index: {}]   ;;  %s2439_s6 = inlined_call_operand.vmem [shape: f32[1,8,1], index: 6, kind: output, shape index: {1}]   ;;  %s2440_s5 = inlined_call_operand.vmem [shape: f32[8,512], index: 5, kind: output, shape index: {0}]   ;;  %s2441_s7 = inlined_call_operand.vmem [shape: f32[1,8,1], index: 7, kind: output, shape index: {2}]  }
   0x1   :  { %v2034_v0 = vld [vmem:[%s2434_s0] sm:$0xff]  ;;  %v2039_v1 = vld [vmem:[%s2434_s0 + $0x8] sm:$0xff]  ;;  %313 = vmatprep.mubr.f32.mxu0 %v1981_v2  ;;  %384 = vmatprep.mubr.f32.mxu1 %v1981_v2  ;;  %s1983_s0 = smov 17   ;;  %s1985_s28 = smov 1   ;;  %vm232_vm3 = vcmask 31744   ;;  %v1887_v58 = vld [vmem:[%s2438_s1 + $0x10] sm:$0xff] }
   0x2   :  { %213 = vrot.lane.b32.xlu0 %v2034_v0, %s1982_s26  ;;  %v2046_v3 = vcombine.high %v2039_v1, %v2039_v1  ;;  %v2050_v4 = vcombine.high %v2034_v0, %v2034_v0  ;;  %s1986_s29 = smov 127   ;;  %s1987_s30 = smov 113   ;;  %v1799_v6 = vld [vmem:[%s2437_s2] sm:$0xff]  ;;  %v2086_v8 = vand.u32 127, %v68_v7  ;;  %v1874_v20 = vld [vmem:[%s2438_s1 + $0x8] sm:$0xff]  ;;  %v1915_v35 = vld [vmem:[%s2438_s1 + $0x30] sm:$0xff] }
   0x3   :  { %s1988_s8 = smov 112   ;;  %s1989_s9 = smov 111   ;;  %1978 = vset.pattern.permute.xlu0 %v1990_v5  ;;  %v212_v41 = vld [vmem:[%s2438_s1] sm:$0xff]  ;;  %v1908_v32 = vld [vmem:[%s2438_s1 + $0x28] sm:$0xff]  ;;  %v1922_v50 = vld [vmem:[%s2438_s1 + $0x38] sm:$0xff] }
   0x4   :  { %219 = vrot.lane.b32.xlu1 %v2046_v3, %s1982_s26  ;;  %v2089_v9 = vadd.s32 256, %v2086_v8  ;;  %v77_v10 = vand.u32 255, %v2086_v8  ;;  %vm221_vm0 = vcmp.lt.s32.totalorder %v2086_v8, 16  ;;  %v2095_v13 = vadd.s32 128, %v2086_v8 }
   0x5   :  { %v125_v18 = vand.u32 15, %v2086_v8  ;;  %v2115_v23 = vadd.s32 384, %v2086_v8  ;;  %vm199_vm5 = vcmp.lt.s32.totalorder %v2086_v8, 17  ;;  %vm556_vm12 = vcmp.lt.s32.totalorder %v2086_v8, 15 }
   0x6   :  { %215 = vrot.lane.b32.xlu0 %v2050_v4, %s1982_s26  ;;  %v91_v12 = vand.u32 255, %v2089_v9  ;;  %vm2099_vm2 = vcmp.ge.s32.totalorder %v77_v10, 16  ;;  %v132_v22 = vand.u32 15, %v2095_v13  ;;  %v139_v26 = vand.u32 15, %v2089_v9 }
   0x7   :  { %vm2131_vm6 = vcmp.ge.s32.totalorder %v125_v18, 1  ;;  %v146_v33 = vand.u32 15, %v2115_v23  ;;  %vm2179_vm13 = vcmp.lt.s32.totalorder %v125_v18, 15 }
   0x8   :  { %217 = vrot.lane.b32.xlu1 %v2039_v1, %s1982_s26  ;;  %vm2109_vm4 = vcmp.ge.s32.totalorder %v91_v12, 16  ;;  %vm2136_vm7 = vcmp.ge.s32.totalorder %v132_v22, 1  ;;  %vm2143_vm8 = vcmp.ge.s32.totalorder %v139_v26, 1  ;;  %vm204_vm9 = vmand %vm2099_vm2, %vm2131_vm6  ;;  %vm2184_vm14 = vcmp.lt.s32.totalorder %v132_v22, 15 }
   0x9   :  { %vm2159_vm10 = vcmp.ge.s32.totalorder %v146_v33, 1  ;;  %vm206_vm11 = vmand %vm2109_vm4, %vm2143_vm8  ;;  %vm2190_vm15 = vcmp.lt.s32.totalorder %v139_v26, 15 }
   0xa   :  { %191 = vrot.lane.b32.xlu0 %v2034_v0, %s1983_s0 }
   0xc   :  { %193 = vrot.lane.b32.xlu1 %v2050_v4, %s1983_s0 }
   0xe   :  { %197 = vrot.lane.b32.xlu0 %v2046_v3, %s1983_s0 }
  0x10   :  { %195 = vrot.lane.b32.xlu1 %v2039_v1, %s1983_s0 }
  0x12   :  { %548 = vrot.lane.b32.xlu0 %v2034_v0, %s1984_s27 }
  0x14   :  { %550 = vrot.lane.b32.xlu1 %v2050_v4, %s1984_s27 }
  0x16   :  { %554 = vrot.lane.b32.xlu0 %v2046_v3, %s1984_s27 }
  0x18   :  { %552 = vrot.lane.b32.xlu1 %v2039_v1, %s1984_s27 }
  0x1a   :  { %732 = vrot.lane.b32.xlu0 %v2034_v0, %s1985_s28 }
  0x1c   :  { %734 = vrot.lane.b32.xlu1 %v2050_v4, %s1985_s28 }
  0x1e   :  { %738 = vrot.lane.b32.xlu0 %v2046_v3, %s1985_s28 }
  0x20   :  { %736 = vrot.lane.b32.xlu1 %v2039_v1, %s1985_s28 }
  0x22   :  { %1073 = vrot.lane.b32.xlu0 %v2050_v4, %s1986_s29 }
  0x24   :  { %1075 = vrot.lane.b32.xlu1 %v2039_v1, %s1986_s29 }
  0x26   :  { %1071 = vrot.lane.b32.xlu0 %v2034_v0, %s1986_s29 }
  0x28   :  { %1077 = vrot.lane.b32.xlu1 %v2046_v3, %s1986_s29 }
  0x2a   :  { %1253 = vrot.lane.b32.xlu0 %v2050_v4, %s1987_s30 }
  0x2c   :  { %1255 = vrot.lane.b32.xlu1 %v2039_v1, %s1987_s30 }
  0x2e   :  { %1251 = vrot.lane.b32.xlu0 %v2034_v0, %s1987_s30 }
  0x30   :  { %1257 = vrot.lane.b32.xlu1 %v2046_v3, %s1987_s30 }
  0x32   :  { %1437 = vrot.lane.b32.xlu0 %v2050_v4, %s1988_s8 }
  0x34   :  { %1439 = vrot.lane.b32.xlu1 %v2039_v1, %s1988_s8 }
  0x36   :  { %1435 = vrot.lane.b32.xlu0 %v2034_v0, %s1988_s8 }
  0x38   :  { %1441 = vrot.lane.b32.xlu1 %v2046_v3, %s1988_s8 }
  0x3a   :  { %1617 = vrot.lane.b32.xlu0 %v2050_v4, %s1989_s9 }
  0x3c   :  { %1619 = vrot.lane.b32.xlu1 %v2039_v1, %s1989_s9 }
  0x3e   :  { %1615 = vrot.lane.b32.xlu0 %v2034_v0, %s1989_s9 }
  0x40   :  { %1621 = vrot.lane.b32.xlu1 %v2046_v3, %s1989_s9 }
  0x42   :  { %1802 = vperm.xlu0 %1978, %v1799_v6  }
  0x74   :  { %v214_v11 = vpop.permute.xlu0 %213 }
  0x76   :  { %v220_v14 = vpop.permute.xlu1 %219 }
  0x77   :  { %v225_v15 = vsel %vm221_vm0, %v220_v14, %v214_v11 }
  0x78   :  { %v216_v17 = vpop.permute.xlu0 %215  ;;  %v226_v25 = vsel %vm2099_vm2, %v225_v15, 0.0 }
  0x79   :  { %v224_v19 = vsel %vm221_vm0, %v214_v11, %v216_v17 }
  0x7a   :  { %v218_v24 = vpop.permute.xlu1 %217  ;;  %1875 = vmatprep.subr.msk.mxu0 %vm236_vm1, %v224_v19 }
  0x7b   :  { %v223_v27 = vsel %vm221_vm0, %v216_v17, %v218_v24  ;;  %1876 = vmatpush1.msk.msra.mxu0 %vm236_vm1, %v226_v25  ;;  %v222_v28 = vsel %vm221_vm0, %v218_v24, %v220_v14  ;;  %vm561_vm0 = vmand %vm2099_vm2, %vm2179_vm13  ;;  %v1894_v14 = vld [vmem:[%s2438_s1 + $0x18] sm:$0xff]  ;;  %v84_v24 = vand.u32 255, %v2095_v13 }
  0x7c   :  { %1877 = vmatmul.mubr.msk.f32.vlgmr.msra.gmra.mrb[0].mxu0 %vm232_vm3, %v1874_v20  ;;  %1878 = vmatprep.subr.msk.mxu1 %vm236_vm1, %v222_v28  ;;  %v192_v29 = vpop.permute.xlu0 %191  ;;  %v228_v30 = vsel %vm2109_vm4, %v223_v27, 0.0  ;;  %vm563_vm2 = vmand %vm2109_vm4, %vm2190_vm15  ;;  %vm740_vm4 = vcmp.lt.s32.totalorder %v2086_v8, 1 }
  0x7d   :  { %1879 = vmatpush1.msk.msra.mxu1 %vm236_vm1, %v228_v30  ;;  %470 = vmatprep.mubr.f32.mxu0 %v1981_v2 }
  0x7e   :  { %v194_v34 = vpop.permute.xlu1 %193  ;;  %1880 = vmatmul.mubr.msk.f32.vlgmr.msra.gmra.mrb[0].mxu1 %vm232_vm3, %v1874_v20 }
  0x7f   :  { %v202_v36 = vsel %vm199_vm5, %v192_v29, %v194_v34  ;;  %541 = vmatprep.mubr.f32.mxu1 %v1981_v2 }
  0x80   :  { %v209_v37 = vsel %vm2136_vm7, %v202_v36, 0.0  ;;  %v198_v38 = vpop.permute.xlu0 %197 }
  0x81   :  { %v203_v39 = vsel %vm199_vm5, %v198_v38, %v192_v29  ;;  %1881 = vmatprep.subr.msk.mxu0 %vm236_vm1, %v209_v37 }
  0x82   :  { %v208_v42 = vsel %vm204_vm9, %v203_v39, 0.0  ;;  %v196_v43 = vpop.permute.xlu1 %195  ;;  %vm1079_vm9 = vcmp.lt.s32.totalorder %v2086_v8, 127 }
  0x83   :  { %v200_v44 = vsel %vm199_vm5, %v196_v43, %v198_v38  ;;  %v201_v45 = vsel %vm199_vm5, %v194_v34, %v196_v43  ;;  %1882 = vmatpush1.msk.msra.mxu0 %vm236_vm1, %v208_v42  ;;  %vm2207_vm5 = vcmp.lt.s32.totalorder %v146_v33, 15 }
  0x84   :  { %v210_v46 = vsel %vm206_vm11, %v201_v45, 0.0  ;;  %v211_v47 = vsel %vm2159_vm10, %v200_v44, 0.0  ;;  %1883 = vmatmul.mubr.msk.f32.vlgmr.msra.gmra.mrb[0].mxu0 %vm232_vm3, %v212_v41  ;;  %v549_v48 = vpop.permute.xlu0 %548  ;;  %vm2281_vm11 = vcmp.lt.s32.totalorder %v84_v24, 240 }
  0x85   :  { %1884 = vmatprep.subr.msk.mxu1 %vm236_vm1, %v211_v47  ;;  %650 = vmatprep.mubr.f32.mxu0 %v1981_v2 }
  0x86   :  { %v551_v51 = vpop.permute.xlu1 %550  ;;  %1885 = vmatpush1.msk.msra.mxu1 %vm236_vm1, %v210_v46 }
  0x87   :  { %v559_v53 = vsel %vm556_vm12, %v549_v48, %v551_v51  ;;  %1886 = vmatmul.mubr.msk.f32.vlgmr.msra.gmra.mrb[0].mxu1 %vm232_vm3, %v212_v41 }
  0x88   :  { %v566_v54 = vsel %vm2184_vm14, %v559_v53, 0.0  ;;  %v555_v55 = vpop.permute.xlu0 %554  ;;  %721 = vmatprep.mubr.f32.mxu1 %v1981_v2 }
  0x89   :  { %v560_v56 = vsel %vm556_vm12, %v555_v55, %v549_v48  ;;  %1888 = vmatprep.subr.msk.mxu0 %vm236_vm1, %v566_v54 }
  0x8a   :  { %v565_v59 = vsel %vm561_vm0, %v560_v56, 0.0  ;;  %v553_v60 = vpop.permute.xlu1 %552  ;;  %vm1265_vm0 = vmand %vm2281_vm11, %vm2136_vm7 }
  0x8b   :  { %v557_v61 = vsel %vm556_vm12, %v553_v60, %v555_v55  ;;  %v558_v62 = vsel %vm556_vm12, %v551_v51, %v553_v60  ;;  %1889 = vmatpush1.msk.msra.mxu0 %vm236_vm1, %v565_v59  ;;  %vm1259_vm12 = vcmp.lt.s32.totalorder %v2086_v8, 113 }
  0x8c   :  { %v567_v63 = vsel %vm563_vm2, %v558_v62, 0.0  ;;  %v568_v5 = vsel %vm2207_vm5, %v557_v61, 0.0  ;;  %1890 = vmatmul.mubr.msk.f32.vlgmr.msra.gmra.mrb[0].mxu0 %vm232_vm3, %v1887_v58  ;;  %v733_v6 = vpop.permute.xlu0 %732 }
  0x8d   :  { %1891 = vmatprep.subr.msk.mxu1 %vm236_vm1, %v568_v5  ;;  %830 = vmatprep.mubr.f32.mxu0 %v1981_v2 }
  0x8e   :  { %v735_v7 = vpop.permute.xlu1 %734  ;;  %1892 = vmatpush1.msk.msra.mxu1 %vm236_vm1, %v567_v63 }
  0x8f   :  { %v743_v9 = vsel %vm740_vm4, %v733_v6, %v735_v7  ;;  %1893 = vmatmul.mubr.msk.f32.vlgmr.msra.gmra.mrb[0].mxu1 %vm232_vm3, %v1887_v58 }
  0x90   :  { %v746_v10 = vsel %vm2136_vm7, %v743_v9, 0.0  ;;  %v739_v11 = vpop.permute.xlu0 %738  ;;  %901 = vmatprep.mubr.f32.mxu1 %v1981_v2 }
  0x91   :  { %v744_v12 = vsel %vm740_vm4, %v739_v11, %v733_v6  ;;  %1895 = vmatprep.subr.msk.mxu0 %vm236_vm1, %v746_v10 }
  0x92   :  { %v745_v15 = vsel %vm2131_vm6, %v744_v12, 0.0  ;;  %v737_v16 = vpop.permute.xlu1 %736 }
  0x93   :  { %v741_v17 = vsel %vm740_vm4, %v737_v16, %v739_v11  ;;  %v742_v18 = vsel %vm740_vm4, %v735_v7, %v737_v16  ;;  %1896 = vmatpush1.msk.msra.mxu0 %vm236_vm1, %v745_v15 }
  0x94   :  { %v747_v19 = vsel %vm2143_vm8, %v742_v18, 0.0  ;;  %v748_v20 = vsel %vm2159_vm10, %v741_v17, 0.0  ;;  %1897 = vmatmul.mubr.msk.f32.vlgmr.msra.gmra.mrb[0].mxu0 %vm232_vm3, %v1894_v14  ;;  %v1074_v21 = vpop.permute.xlu0 %1073  ;;  %1902 = vmatprep.subr.msk.mxu0 %vm236_vm1, %v2050_v4 }
  0x95   :  { %1898 = vmatprep.subr.msk.mxu1 %vm236_vm1, %v748_v20  ;;  %1903 = vmatpush1.msk.msra.mxu0 %vm236_vm1, %v2034_v0  ;;  %v1901_v0 = vld [vmem:[%s2438_s1 + $0x20] sm:$0xff] }
  0x96   :  { %1899 = vmatpush1.msk.msra.mxu1 %vm236_vm1, %v747_v19  ;;  %v1076_v22 = vpop.permute.xlu1 %1075  ;;  %989 = vmatprep.mubr.f32.mxu0 %v1981_v2 }
  0x97   :  { %1900 = vmatmul.mubr.msk.f32.vlgmr.msra.gmra.mrb[0].mxu1 %vm232_vm3, %v1894_v14  ;;  %v1081_v25 = vsel %vm1079_vm9, %v1074_v21, %v1076_v22  ;;  %1905 = vmatprep.subr.msk.mxu1 %vm236_vm1, %v2046_v3 }
  0x98   :  { %v1085_v4 = vsel %vm2184_vm14, %v1081_v25, 0.0  ;;  %v1072_v26 = vpop.permute.xlu0 %1071  ;;  %1906 = vmatpush1.msk.msra.mxu1 %vm236_vm1, %v2039_v1  ;;  %1060 = vmatprep.mubr.f32.mxu1 %v1981_v2  ;;  %v98_v1 = vand.u32 255, %v2115_v23 }
  0x99   :  { %v1082_v13 = vsel %vm1079_vm9, %v1072_v26, %v1074_v21  ;;  %1909 = vmatprep.subr.msk.mxu0 %vm236_vm1, %v1085_v4 }
  0x9a   :  { %v1078_v27 = vpop.permute.xlu1 %1077  ;;  %v1084_v3 = vsel %vm2179_vm13, %v1082_v13, 0.0  ;;  %vm2303_vm2 = vcmp.lt.s32.totalorder %v98_v1, 240 }
  0x9b   :  { %v1080_v29 = vsel %vm1079_vm9, %v1076_v22, %v1078_v27  ;;  %v1083_v30 = vsel %vm1079_vm9, %v1078_v27, %v1072_v26  ;;  %vm1267_vm7 = vmand %vm2303_vm2, %vm2159_vm10  ;;  %vm1443_vm10 = vcmp.lt.s32.totalorder %v2086_v8, 112 }
  0x9c   :  { %1904 = vmatmul.mubr.msk.f32.vlgmr.msra.gmra.mrb[0].mxu0 %vm232_vm3, %v1901_v0  ;;  %v1087_v33 = vsel %vm2207_vm5, %v1083_v30, 0.0  ;;  %v1254_v34 = vpop.permute.xlu0 %1253  ;;  %v1086_v36 = vsel %vm2190_vm15, %v1080_v29, 0.0 }
  0x9d   :  { %1910 = vmatpush1.msk.msra.mxu0 %vm236_vm1, %v1084_v3  ;;  %1912 = vmatprep.subr.msk.mxu1 %vm236_vm1, %v1087_v33 }
  0x9e   :  { %v1256_v23 = vpop.permute.xlu1 %1255  ;;  %1169 = vmatprep.mubr.f32.mxu0 %v1981_v2 }
  0x9f   :  { %1907 = vmatmul.mubr.msk.f32.vlgmr.msra.gmra.mrb[0].mxu1 %vm232_vm3, %v1901_v0  ;;  %v1261_v38 = vsel %vm1259_vm12, %v1254_v34, %v1256_v23 }
  0xa0   :  { %v1269_v39 = vsel %vm1265_vm0, %v1261_v38, 0.0  ;;  %1913 = vmatpush1.msk.msra.mxu1 %vm236_vm1, %v1086_v36  ;;  %v1252_v41 = vpop.permute.xlu0 %1251  ;;  %1240 = vmatprep.mubr.f32.mxu1 %v1981_v2 }
  0xa1   :  { %v1262_v42 = vsel %vm1259_vm12, %v1252_v41, %v1254_v34  ;;  %1916 = vmatprep.subr.msk.mxu0 %vm236_vm1, %v1269_v39 }
  0xa2   :  { %v1258_v43 = vpop.permute.xlu1 %1257  ;;  %v1268_v44 = vsel %vm2131_vm6, %v1262_v42, 0.0  ;;  %vm1623_vm6 = vcmp.lt.s32.totalorder %v2086_v8, 111  ;;  %v1929_v8 = vld [vmem:[%s2438_s1 + $0x40] sm:$0xff] }
  0xa3   :  { %v1260_v45 = vsel %vm1259_vm12, %v1256_v23, %v1258_v43  ;;  %v1263_v46 = vsel %vm1259_vm12, %v1258_v43, %v1252_v41 }
  0xa4   :  { %1911 = vmatmul.mubr.msk.f32.vlgmr.msra.gmra.mrb[0].mxu0 %vm232_vm3, %v1908_v32  ;;  %v1271_v40 = vsel %vm1267_vm7, %v1263_v46, 0.0  ;;  %v1438_v47 = vpop.permute.xlu0 %1437  ;;  %v1270_v48 = vsel %vm2143_vm8, %v1260_v45, 0.0  ;;  %vm1629_vm8 = vmand %vm2281_vm11, %vm2184_vm14 }
  0xa5   :  { %1917 = vmatpush1.msk.msra.mxu0 %vm236_vm1, %v1268_v44  ;;  %1919 = vmatprep.subr.msk.mxu1 %vm236_vm1, %v1271_v40  ;;  %vm1631_vm14 = vmand %vm2303_vm2, %vm2207_vm5 }
  0xa6   :  { %v1440_v31 = vpop.permute.xlu1 %1439  ;;  %1353 = vmatprep.mubr.f32.mxu0 %v1981_v2 }
  0xa7   :  { %1914 = vmatmul.mubr.msk.f32.vlgmr.msra.gmra.mrb[0].mxu1 %vm232_vm3, %v1908_v32  ;;  %v1445_v51 = vsel %vm1443_vm10, %v1438_v47, %v1440_v31 }
  0xa8   :  { %v1449_v53 = vsel %vm2281_vm11, %v1445_v51, 0.0  ;;  %1920 = vmatpush1.msk.msra.mxu1 %vm236_vm1, %v1270_v48  ;;  %v1436_v54 = vpop.permute.xlu0 %1435  ;;  %1424 = vmatprep.mubr.f32.mxu1 %v1981_v2 }
  0xa9   :  { %1923 = vmatprep.subr.msk.mxu0 %vm236_vm1, %v1449_v53  ;;  %v1446_v56 = vsel %vm1443_vm10, %v1436_v54, %v1438_v47 }
  0xaa   :  { %v1442_v55 = vpop.permute.xlu1 %1441 }
  0xab   :  { %v1447_v58 = vsel %vm1443_vm10, %v1442_v55, %v1436_v54  ;;  %v1444_v61 = vsel %vm1443_vm10, %v1440_v31, %v1442_v55 }
  0xac   :  { %1918 = vmatmul.mubr.msk.f32.vlgmr.msra.gmra.mrb[0].mxu0 %vm232_vm3, %v1915_v35  ;;  %v1451_v59 = vsel %vm2303_vm2, %v1447_v58, 0.0  ;;  %v1618_v60 = vpop.permute.xlu0 %1617 }
  0xad   :  { %1924 = vmatpush1.msk.msra.mxu0 %vm236_vm1, %v1446_v56  ;;  %1926 = vmatprep.subr.msk.mxu1 %vm236_vm1, %v1451_v59 }
  0xae   :  { %v1620_v62 = vpop.permute.xlu1 %1619  ;;  %1533 = vmatprep.mubr.f32.mxu0 %v1981_v2 }
  0xaf   :  { %1921 = vmatmul.mubr.msk.f32.vlgmr.msra.gmra.mrb[0].mxu1 %vm232_vm3, %v1915_v35  ;;  %v1625_v63 = vsel %vm1623_vm6, %v1618_v60, %v1620_v62 }
  0xb0   :  { %1927 = vmatpush1.msk.msra.mxu1 %vm236_vm1, %v1444_v61  ;;  %v1633_v5 = vsel %vm1629_vm8, %v1625_v63, 0.0  ;;  %v1616_v6 = vpop.permute.xlu0 %1615  ;;  %1604 = vmatprep.mubr.f32.mxu1 %v1981_v2 }
  0xb1   :  { %v1626_v7 = vsel %vm1623_vm6, %v1616_v6, %v1618_v60  ;;  %1930 = vmatprep.subr.msk.mxu0 %vm236_vm1, %v1633_v5 }
  0xb2   :  { %v1632_v9 = vsel %vm2179_vm13, %v1626_v7, 0.0  ;;  %v1622_v10 = vpop.permute.xlu1 %1621  ;;  %vm63_vm13 = vcmask 7168  }
  0xb3   :  { %v1624_v11 = vsel %vm1623_vm6, %v1620_v62, %v1622_v10  ;;  %v1627_v12 = vsel %vm1623_vm6, %v1622_v10, %v1616_v6  ;;  %64 = vst.msk [vmem:[%s2439_s6] sm:$0xff] %vm63_vm13, %v1981_v2  ;;  %65 = vst.msk [vmem:[%s2441_s7] sm:$0xff] %vm63_vm13, %v1981_v2 }
  0xb4   :  { %1925 = vmatmul.mubr.msk.f32.vlgmr.msra.gmra.mrb[0].mxu0 %vm232_vm3, %v1922_v50  ;;  %v1635_v14 = vsel %vm1631_vm14, %v1627_v12, 0.0  ;;  %v1634_v57 = vsel %vm2190_vm15, %v1624_v11, 0.0 }
  0xb5   :  { %1931 = vmatpush1.msk.msra.mxu0 %vm236_vm1, %v1632_v9  ;;  %1933 = vmatprep.subr.msk.mxu1 %vm236_vm1, %v1635_v14 }
  0xb6   :  { %1717 = vmatprep.mubr.f32.mxu0 %v1981_v2 }
  0xb7   :  { %1928 = vmatmul.mubr.msk.f32.vlgmr.msra.gmra.mrb[0].mxu1 %vm232_vm3, %v1922_v50 }
  0xb8   :  { %1934 = vmatpush1.msk.msra.mxu1 %vm236_vm1, %v1634_v57  ;;  %1788 = vmatprep.mubr.f32.mxu1 %v1981_v2 }
  0xba   :  { %v1813_v1 = vld [vmem:[%s2439_s6] sm:$0xff] }
  0xbb   :  { %v1822_v30 = vld [vmem:[%s2441_s7] sm:$0xff] }
  0xbc   :  { %1932 = vmatmul.mubr.msk.f32.vlgmr.msra.gmra.mrb[0].mxu0 %vm232_vm3, %v1929_v8 }
  0xbf   :  { %1935 = vmatmul.mubr.msk.f32.vlgmr.msra.gmra.mrb[0].mxu1 %vm232_vm3, %v1929_v8 }
  0xc1   :  { %v1803_v49 = vpop.permute.xlu0 %1802 }
 0x18f   :  { %v1719_v52 = vpop.f32.mrb[0].mxu0 }
 0x190   :  { %v1805_v15 = vadd.f32 %v1803_v49, %v1719_v52  ;;  %v1721_v16 = vpop.f32.mrb[1].mxu0 }
 0x191   :  { %v1806_v17 = vadd.f32 %v1803_v49, %v1721_v16 }
 0x192   :  { %1809 = vst [vmem:[%s2440_s5] sm:$0xff] %v1805_v15  ;;  %v1790_v18 = vpop.f32.mrb[0].mxu1  ;;  %v1823_v19 = vmul.f32 %v1805_v15, %v1805_v15 }
 0x193   :  { %1810 = vst [vmem:[%s2440_s5 + $0x8] sm:$0xff] %v1806_v17  ;;  %v1814_v20 = vadd.f32 %v1806_v17, %v1805_v15  ;;  %v1824_v21 = vmul.f32 %v1806_v17, %v1806_v17  ;;  %v1807_v22 = vadd.f32 %v1803_v49, %v1790_v18  ;;  %v1792_v24 = vpop.f32.mrb[1].mxu1 }
 0x194   :  { %v1808_v25 = vadd.f32 %v1803_v49, %v1792_v24 }
 0x195   :  { %1811 = vst [vmem:[%s2440_s5 + $0x10] sm:$0xff] %v1807_v22  ;;  %v1825_v4 = vmul.f32 %v1807_v22, %v1807_v22  ;;  %v1815_v26 = vadd.f32 %v1814_v20, %v1807_v22  ;;  %v1827_v0 = vadd.f32 %v1824_v21, %v1823_v19 }
 0x196   :  { %1812 = vst [vmem:[%s2440_s5 + $0x18] sm:$0xff] %v1808_v25  ;;  %v1826_v13 = vmul.f32 %v1808_v25, %v1808_v25 }
 0x197   :  { %v1816_v27 = vadd.f32 %v1815_v26, %v1808_v25  ;;  %v1828_v3 = vadd.f32 %v1827_v0, %v1825_v4 }
 0x199   :  { %1817 = vadd.xlane.f32.xlu1 %v1816_v27  ;;  %v1829_v28 = vadd.f32 %v1828_v3, %v1826_v13 }
 0x19b   :  { %1830 = vadd.xlane.f32.xlu0 %v1829_v28 }
 0x226   :  { %v1818_v29 = vpop.xlane.xlu1 %1817 }
 0x227   :  { %v1819_v33 = vadd.f32 %v1818_v29, %v1813_v1 }
 0x228   :  { %v1831_v34 = vpop.xlane.xlu0 %1830 }
 0x229   :  { %1821 = vst.msk [vmem:[%s2439_s6] sm:$0xff] %vm63_vm13, %v1819_v33  ;;  %v1832_v36 = vadd.f32 %v1831_v34, %v1822_v30 }
 0x22b   :  { %1833 = vst.msk [vmem:[%s2441_s7] sm:$0xff] %vm63_vm13, %v1832_v36 }

</bundles_post_ra>
